<compile_context>
chip_gen: v5e
topology: v5e:2x2
jax: 0.10.0
libtpu: 0.0.40
codegen_flags: <defaults>
</compile_context>

<pallas_src>
import functools

import jax
import jax.numpy as jnp
import numpy as np
from jax.experimental import pallas as pl
from jax.experimental.pallas import tpu as pltpu


_GATE_TILE = 128  # each gate's output columns live in their own 128-lane tile


def _round8(n):
    return (n + 7) // 8 * 8


def _slab_layout(z_dim, d_in, h_dim):
    """Row offsets of each weight block inside the packed weight slab."""
    blocks = [("wz", z_dim), ("wb", d_in), ("wx", d_in),
              ("ws12", h_dim), ("w3", h_dim), ("wox", h_dim), ("wo", h_dim)]
    offs, r = {}, 0
    for name, rows in blocks:
        offs[name] = r
        r += _round8(rows)
    return offs, r


# ---------------------------------------------------------------------------
# Host-side (run ONCE, outside the jitted forward): pack all params into one
# weight slab + one bias slab, gate-padded to 128-lane tiles, out_fc folded.
# ---------------------------------------------------------------------------
def pack_generator_params(params, *, h_dim):
    f32 = jnp.float32
    d_in, z_dim = params["Wz"].shape
    HP = _GATE_TILE
    WP = 3 * HP

    wzT = params["Wz"].T.astype(f32)                 # (Z, D_in)
    wbT = params["Wb"].T.astype(f32)                 # (D_in, H)

    def split(W):
        # GRUI concatenates [state, x]: first h_dim columns act on state.
        return W[:, :h_dim].T.astype(f32), W[:, h_dim:].T.astype(f32)

    w1sT, w1xT = split(params["W1"])
    w2sT, w2xT = split(params["W2"])
    w3sT, w3xT = split(params["W3"])

    # x-projection weights, each gate in its own 128-lane tile.
    wxT = jnp.zeros((d_in, WP), f32)
    wxT = wxT.at[:, 0:h_dim].set(w1xT)
    wxT = wxT.at[:, HP:HP + h_dim].set(w2xT)
    wxT = wxT.at[:, 2 * HP:2 * HP + h_dim].set(w3xT)

    # state-projection weights for gates 1/2, tile-aligned.
    wsT12 = jnp.zeros((h_dim, 2 * HP), f32)
    wsT12 = wsT12.at[:, 0:h_dim].set(w1sT)
    wsT12 = wsT12.at[:, HP:HP + h_dim].set(w2sT)

    woT = params["Wo"].T.astype(f32)                 # (H, D_in)
    woT_pad = jnp.zeros((h_dim, HP), f32).at[:, :d_in].set(woT)

    # Fold out_fc into the next-step x-projection:
    # (state @ WoT + bo) @ WxT + bx == state @ (WoT @ WxT) + (bo @ WxT + bx)
    woxT = woT @ wxT                                 # (H, 3*HP)

    bx = jnp.zeros((1, WP), f32)
    bx = bx.at[0, 0:h_dim].set(params["b1"].astype(f32))
    bx = bx.at[0, HP:HP + h_dim].set(params["b2"].astype(f32))
    bx = bx.at[0, 2 * HP:2 * HP + h_dim].set(params["b3"].astype(f32))

    bo = params["bo"].reshape(1, d_in).astype(f32)
    box = bo @ wxT + bx                              # (1, 3*HP)

    offs, total_rows = _slab_layout(z_dim, d_in, h_dim)
    w_slab = jnp.zeros((total_rows, WP), f32)

    def place(slab, name, block):
        r0 = offs[name]
        rows, cols = block.shape
        return slab.at[r0:r0 + rows, :cols].set(block)

    w_slab = place(w_slab, "wz", wzT)
    w_slab = place(w_slab, "wb", wbT)
    w_slab = place(w_slab, "wx", wxT)
    w_slab = place(w_slab, "ws12", wsT12)
    w_slab = place(w_slab, "w3", w3sT)
    w_slab = place(w_slab, "wox", woxT)
    w_slab = place(w_slab, "wo", woT_pad)

    b_slab = jnp.zeros((5, WP), f32)
    b_slab = b_slab.at[0, :d_in].set(params["bz"].astype(f32))
    b_slab = b_slab.at[1, :h_dim].set(params["bb"].astype(f32))
    b_slab = b_slab.at[2, :].set(bx[0])
    b_slab = b_slab.at[3, :].set(box[0])
    b_slab = b_slab.at[4, :d_in].set(bo[0])
    return w_slab, b_slab


# ---------------------------------------------------------------------------
# Pallas kernel: whole forward (z_fc + belta_fc + GRU-I recurrence + out_fc)
# in one invocation.  4 VMEM inputs, 1 lane-dense output, no grid, no scratch.
# ---------------------------------------------------------------------------
def _gen_z2seq_kernel(z_ref, td_ref, w_ref, b_ref, out_ref, *,
                      seq_len, batch, h_dim, d_in, z_dim, offs):
    B, H = batch, h_dim          # B is already padded to a multiple of 8
    HP = _GATE_TILE

    # -- single weight / bias slab, sliced with static tile-aligned views ---
    wzT = w_ref[offs["wz"]:offs["wz"] + z_dim, :d_in]
    wbT = w_ref[offs["wb"]:offs["wb"] + d_in, :H]
    wxT = w_ref[offs["wx"]:offs["wx"] + d_in, :]
    wsT12 = w_ref[offs["ws12"]:offs["ws12"] + H, :2 * HP]
    w3sT = w_ref[offs["w3"]:offs["w3"] + H, :H]
    woxT = w_ref[offs["wox"]:offs["wox"] + H, :]
    woT = w_ref[offs["wo"]:offs["wo"] + H, :HP]

    bz = b_ref[0:1, :d_in]
    bb = b_ref[1:2, :H]
    bx = b_ref[2:3, :]
    box = b_ref[3:4, :]
    bo = b_ref[4:5, :HP]

    # -- prologue: everything independent of the recurrent state ------------
    x0 = jnp.dot(z_ref[...], wzT, preferred_element_type=jnp.float32) + bz
    belta = jnp.dot(td_ref[...], wbT, preferred_element_type=jnp.float32) + bb
    belta = jnp.exp(-jnp.maximum(belta, 0.0))                       # (S*B, H)
    xp = jnp.dot(x0, wxT, preferred_element_type=jnp.float32) + bx  # (B, 3*HP)

    # -- t = 0 peeled: zero previous state => state0 = sigmoid(g1)*tanh(g3) -
    state = jax.nn.sigmoid(xp[:, :H]) * jnp.tanh(xp[:, 2 * HP:2 * HP + H])
    states = [state]
    xp = jnp.dot(state, woxT, preferred_element_type=jnp.float32) + box

    # -- recurrence, fully unrolled (seq_len is small and static) -----------
    for t in range(1, seq_len):
        s = belta[t * B:(t + 1) * B, :] * state                     # 8-row aligned
        sp = jnp.dot(s, wsT12, preferred_element_type=jnp.float32)  # (B, 2*HP)
        ur = jax.nn.sigmoid(sp + xp[:, :2 * HP])
        u = ur[:, :H]
        r = ur[:, HP:HP + H]
        cand = jnp.tanh(
            jnp.dot(r * s, w3sT, preferred_element_type=jnp.float32)
            + xp[:, 2 * HP:2 * HP + H])
        state = s + u * (cand - s)                                  # (B, H)
        states.append(state)
        if t + 1 < seq_len:
            # out_fc folded into the next step's x-projection.
            xp = jnp.dot(state, woxT, preferred_element_type=jnp.float32) + box

    # -- epilogue: one batched out_fc, single lane-dense (128-wide) store ---
    states_all = jnp.concatenate(states, axis=0)                    # (S*B, H)
    outs = jnp.dot(states_all, woT, preferred_element_type=jnp.float32) + bo
    out_ref[...] = outs


# ---------------------------------------------------------------------------
# Jitted forward: only input-dependent plumbing + the pallas_call.
# ---------------------------------------------------------------------------
@functools.partial(jax.jit, static_argnames=("h_dim",))
def generator_z2seq_pallas(z, time_delta, w_slab, b_slab, *, h_dim):
    B, z_dim = z.shape
    _, seq_len, d_in = time_delta.shape
    BP = _round8(B)                      # pad batch to a full sublane group
    f32 = jnp.float32
    HP = _GATE_TILE

    zp = jnp.zeros((BP, z_dim), f32).at[:B].set(z.astype(f32))
    td = jnp.transpose(time_delta, (1, 0, 2)).astype(f32)           # (S, B, D)
    tdp = jnp.zeros((seq_len, BP, d_in), f32).at[:, :B].set(td)
    td_flat = tdp.reshape(seq_len * BP, d_in)

    offs, _ = _slab_layout(z_dim, d_in, h_dim)
    kernel = functools.partial(
        _gen_z2seq_kernel, seq_len=seq_len, batch=BP, h_dim=h_dim,
        d_in=d_in, z_dim=z_dim, offs=offs)

    vmem = pl.BlockSpec(memory_space=pltpu.MemorySpace.VMEM)
    out_pad = pl.pallas_call(
        kernel,
        out_shape=jax.ShapeDtypeStruct((seq_len * BP, HP), f32),
        in_specs=[vmem] * 4,
        out_specs=vmem,
    )(zp, td_flat, w_slab, b_slab)

    # (S*BP, 128) -> (B, S, D_in)  (PyTorch convention)
    out = out_pad.reshape(seq_len, BP, HP)[:, :B, :d_in]
    return jnp.transpose(out, (1, 0, 2))


# ---------------------------------------------------------------------------
# Pure-JAX reference (mirrors the PyTorch forward exactly) for verification.
# ---------------------------------------------------------------------------
def generator_z2seq_ref(z, time_delta, params, *, h_dim, seq_len):
    x = z @ params["Wz"].T + params["bz"]
    belta = jnp.einsum("bsd,hd->bsh", time_delta, params["Wb"]) + params["bb"]
    belta = jnp.exp(-jnp.maximum(jnp.zeros_like(belta), belta))

    def grui(b, x, state):
        if state is None:
            state = jnp.zeros_like(b)
        state = b * state
        cat = jnp.concatenate([state, x], axis=-1)
        u = jax.nn.sigmoid(cat @ params["W1"].T + params["b1"])
        r = jax.nn.sigmoid(cat @ params["W2"].T + params["b2"])
        cat2 = jnp.concatenate([r * state, x], axis=-1)
        ns = jnp.tanh(cat2 @ params["W3"].T + params["b3"])
        return (1.0 - u) * state + u * ns

    state = grui(belta[:, 0], x, None)
    out = state @ params["Wo"].T + params["bo"]
    results = [out[:, None, :]]
    for i in range(1, seq_len):
        state = grui(belta[:, i], out, state)
        out = state @ params["Wo"].T + params["bo"]
        results.append(out[:, None, :])
    return jnp.concatenate(results, axis=1)


# ---------------------------------------------------------------------------
if __name__ == "__main__":
    # Small shapes consistent with the module's forward.
    B, z_dim, input_size, h_dim, seq_len = 4, 8, 16, 32, 8

    key = jax.random.PRNGKey(0)
    ks = jax.random.split(key, 14)
    scale = 0.1
    params = {
        "Wz": scale * jax.random.normal(ks[0], (input_size, z_dim), jnp.float32),
        "bz": scale * jax.random.normal(ks[1], (input_size,), jnp.float32),
        "Wb": scale * jax.random.normal(ks[2], (h_dim, input_size), jnp.float32),
        "bb": scale * jax.random.normal(ks[3], (h_dim,), jnp.float32),
        "W1": scale * jax.random.normal(ks[4], (h_dim, input_size + h_dim), jnp.float32),
        "b1": scale * jax.random.normal(ks[5], (h_dim,), jnp.float32),
        "W2": scale * jax.random.normal(ks[6], (h_dim, input_size + h_dim), jnp.float32),
        "b2": scale * jax.random.normal(ks[7], (h_dim,), jnp.float32),
        "W3": scale * jax.random.normal(ks[8], (h_dim, input_size + h_dim), jnp.float32),
        "b3": scale * jax.random.normal(ks[9], (h_dim,), jnp.float32),
        "Wo": scale * jax.random.normal(ks[10], (input_size, h_dim), jnp.float32),
        "bo": scale * jax.random.normal(ks[11], (input_size,), jnp.float32),
    }

    z = jax.random.normal(ks[12], (B, z_dim), jnp.float32)
    time_delta = jax.random.uniform(ks[13], (B, seq_len, input_size), jnp.float32) * 2.0

    # Parameter packing is hoisted out of the jitted forward (done once).
    w_slab, b_slab = pack_generator_params(params, h_dim=h_dim)
    w_slab = jax.block_until_ready(w_slab)

    out = jax.block_until_ready(
        generator_z2seq_pallas(z, time_delta, w_slab, b_slab, h_dim=h_dim))

    ref = generator_z2seq_ref(z, time_delta, params, h_dim=h_dim, seq_len=seq_len)
    np.testing.assert_allclose(np.asarray(out), np.asarray(ref), rtol=1e-5, atol=1e-5)

    print("KERNEL_OK")
</pallas_src>

<mosaic_0001>
module attributes {stable_mosaic.version = 11 : i64} {
  func.func @_gen_z2seq_kernel(%arg0: memref<8x8xf32, #tpu.memory_space<vmem>>, %arg1: memref<64x16xf32, #tpu.memory_space<vmem>>, %arg2: memref<168x384xf32, #tpu.memory_space<vmem>>, %arg3: memref<5x384xf32, #tpu.memory_space<vmem>>, %arg4: memref<64x128xf32, #tpu.memory_space<vmem>>) attributes {dimension_semantics = [], scalar_prefetch = 0 : i64, scratch_operands = 0 : i64, tpu.core_type = #tpu.core_type<tc>} {
    %c0 = arith.constant 0 : index
    %c0_0 = arith.constant 0 : index
    %0 = vector.load %arg2[%c0, %c0_0] : memref<168x384xf32, #tpu.memory_space<vmem>>, vector<8x16xf32>
    %c8 = arith.constant 8 : index
    %c0_1 = arith.constant 0 : index
    %1 = vector.load %arg2[%c8, %c0_1] : memref<168x384xf32, #tpu.memory_space<vmem>>, vector<16x32xf32>
    %c24 = arith.constant 24 : index
    %c0_2 = arith.constant 0 : index
    %2 = vector.load %arg2[%c24, %c0_2] : memref<168x384xf32, #tpu.memory_space<vmem>>, vector<16x384xf32>
    %c40 = arith.constant 40 : index
    %c0_3 = arith.constant 0 : index
    %3 = vector.load %arg2[%c40, %c0_3] : memref<168x384xf32, #tpu.memory_space<vmem>>, vector<32x256xf32>
    %c72 = arith.constant 72 : index
    %c0_4 = arith.constant 0 : index
    %4 = vector.load %arg2[%c72, %c0_4] : memref<168x384xf32, #tpu.memory_space<vmem>>, vector<32x32xf32>
    %c104 = arith.constant 104 : index
    %c0_5 = arith.constant 0 : index
    %5 = vector.load %arg2[%c104, %c0_5] : memref<168x384xf32, #tpu.memory_space<vmem>>, vector<32x384xf32>
    %c136 = arith.constant 136 : index
    %c0_6 = arith.constant 0 : index
    %6 = vector.load %arg2[%c136, %c0_6] : memref<168x384xf32, #tpu.memory_space<vmem>>, vector<32x128xf32>
    %c0_7 = arith.constant 0 : index
    %c0_8 = arith.constant 0 : index
    %7 = vector.load %arg3[%c0_7, %c0_8] : memref<5x384xf32, #tpu.memory_space<vmem>>, vector<1x16xf32>
    %c1 = arith.constant 1 : index
    %c0_9 = arith.constant 0 : index
    %8 = vector.load %arg3[%c1, %c0_9] : memref<5x384xf32, #tpu.memory_space<vmem>>, vector<1x32xf32>
    %c2 = arith.constant 2 : index
    %c0_10 = arith.constant 0 : index
    %9 = vector.load %arg3[%c2, %c0_10] : memref<5x384xf32, #tpu.memory_space<vmem>>, vector<1x384xf32>
    %c3 = arith.constant 3 : index
    %c0_11 = arith.constant 0 : index
    %10 = vector.load %arg3[%c3, %c0_11] : memref<5x384xf32, #tpu.memory_space<vmem>>, vector<1x384xf32>
    %c4 = arith.constant 4 : index
    %c0_12 = arith.constant 0 : index
    %11 = vector.load %arg3[%c4, %c0_12] : memref<5x384xf32, #tpu.memory_space<vmem>>, vector<1x128xf32>
    %c0_13 = arith.constant 0 : index
    %c0_14 = arith.constant 0 : index
    %12 = vector.load %arg0[%c0_13, %c0_14] : memref<8x8xf32, #tpu.memory_space<vmem>>, vector<8x8xf32>
    %cst = arith.constant dense<0.000000e+00> : vector<8x16xf32>
    %13 = tpu.matmul %12, %0, %cst {dimension_numbers = #tpu.dot_dimension_numbers<[1], [0], [0], [1], [0, 0, 1, 1], [], []>} : vector<8x8xf32>, vector<8x16xf32>, vector<8x16xf32> -> vector<8x16xf32>
    %14 = vector.broadcast %7 : vector<1x16xf32> to vector<8x16xf32>
    %15 = arith.addf %13, %14 : vector<8x16xf32>
    %c0_15 = arith.constant 0 : index
    %c0_16 = arith.constant 0 : index
    %16 = vector.load %arg1[%c0_15, %c0_16] : memref<64x16xf32, #tpu.memory_space<vmem>>, vector<64x16xf32>
    %cst_17 = arith.constant dense<0.000000e+00> : vector<64x32xf32>
    %17 = tpu.matmul %16, %1, %cst_17 {dimension_numbers = #tpu.dot_dimension_numbers<[1], [0], [0], [1], [0, 0, 1, 1], [], []>} : vector<64x16xf32>, vector<16x32xf32>, vector<64x32xf32> -> vector<64x32xf32>
    %18 = vector.broadcast %8 : vector<1x32xf32> to vector<64x32xf32>
    %19 = arith.addf %17, %18 : vector<64x32xf32>
    %cst_18 = arith.constant 0.000000e+00 : f32
    %20 = vector.broadcast %cst_18 : f32 to vector<64x32xf32>
    %21 = arith.maximumf %19, %20 : vector<64x32xf32>
    %cst_19 = arith.constant 0.000000e+00 : f32
    %22 = vector.broadcast %cst_19 : f32 to vector<64x32xf32>
    %23 = arith.subf %22, %21 : vector<64x32xf32>
    %24 = math.exp %23 : vector<64x32xf32>
    %cst_20 = arith.constant dense<0.000000e+00> : vector<8x384xf32>
    %25 = tpu.matmul %15, %2, %cst_20 {dimension_numbers = #tpu.dot_dimension_numbers<[1], [0], [0], [1], [0, 0, 1, 1], [], []>} : vector<8x16xf32>, vector<16x384xf32>, vector<8x384xf32> -> vector<8x384xf32>
    %26 = vector.broadcast %9 : vector<1x384xf32> to vector<8x384xf32>
    %27 = arith.addf %25, %26 : vector<8x384xf32>
    %28 = vector.extract_strided_slice %27 {offsets = [0, 0], sizes = [8, 32], strides = [1, 1]} : vector<8x384xf32> to vector<8x32xf32>
    %29 = arith.negf %28 : vector<8x32xf32>
    %30 = math.exp %29 : vector<8x32xf32>
    %cst_21 = arith.constant 1.000000e+00 : f32
    %31 = vector.broadcast %cst_21 : f32 to vector<8x32xf32>
    %32 = arith.addf %31, %30 : vector<8x32xf32>
    %33 = arith.divf %31, %32 : vector<8x32xf32>
    %34 = vector.extract_strided_slice %27 {offsets = [0, 256], sizes = [8, 32], strides = [1, 1]} : vector<8x384xf32> to vector<8x32xf32>
    %35 = math.tanh %34 : vector<8x32xf32>
    %36 = arith.mulf %33, %35 : vector<8x32xf32>
    %cst_22 = arith.constant dense<0.000000e+00> : vector<8x384xf32>
    %37 = tpu.matmul %36, %5, %cst_22 {dimension_numbers = #tpu.dot_dimension_numbers<[1], [0], [0], [1], [0, 0, 1, 1], [], []>} : vector<8x32xf32>, vector<32x384xf32>, vector<8x384xf32> -> vector<8x384xf32>
    %38 = vector.broadcast %10 : vector<1x384xf32> to vector<8x384xf32>
    %39 = arith.addf %37, %38 : vector<8x384xf32>
    %40 = vector.extract_strided_slice %24 {offsets = [8, 0], sizes = [8, 32], strides = [1, 1]} : vector<64x32xf32> to vector<8x32xf32>
    %41 = arith.mulf %40, %36 : vector<8x32xf32>
    %cst_23 = arith.constant dense<0.000000e+00> : vector<8x256xf32>
    %42 = tpu.matmul %41, %3, %cst_23 {dimension_numbers = #tpu.dot_dimension_numbers<[1], [0], [0], [1], [0, 0, 1, 1], [], []>} : vector<8x32xf32>, vector<32x256xf32>, vector<8x256xf32> -> vector<8x256xf32>
    %43 = vector.extract_strided_slice %39 {offsets = [0, 0], sizes = [8, 256], strides = [1, 1]} : vector<8x384xf32> to vector<8x256xf32>
    %44 = arith.addf %42, %43 : vector<8x256xf32>
    %45 = arith.negf %44 : vector<8x256xf32>
    %46 = math.exp %45 : vector<8x256xf32>
    %cst_24 = arith.constant 1.000000e+00 : f32
    %47 = vector.broadcast %cst_24 : f32 to vector<8x256xf32>
    %48 = arith.addf %47, %46 : vector<8x256xf32>
    %49 = arith.divf %47, %48 : vector<8x256xf32>
    %50 = vector.extract_strided_slice %49 {offsets = [0, 0], sizes = [8, 32], strides = [1, 1]} : vector<8x256xf32> to vector<8x32xf32>
    %51 = vector.extract_strided_slice %49 {offsets = [0, 128], sizes = [8, 32], strides = [1, 1]} : vector<8x256xf32> to vector<8x32xf32>
    %52 = arith.mulf %51, %41 : vector<8x32xf32>
    %cst_25 = arith.constant dense<0.000000e+00> : vector<8x32xf32>
    %53 = tpu.matmul %52, %4, %cst_25 {dimension_numbers = #tpu.dot_dimension_numbers<[1], [0], [0], [1], [0, 0, 1, 1], [], []>} : vector<8x32xf32>, vector<32x32xf32>, vector<8x32xf32> -> vector<8x32xf32>
    %54 = vector.extract_strided_slice %39 {offsets = [0, 256], sizes = [8, 32], strides = [1, 1]} : vector<8x384xf32> to vector<8x32xf32>
    %55 = arith.addf %53, %54 : vector<8x32xf32>
    %56 = math.tanh %55 : vector<8x32xf32>
    %57 = arith.subf %56, %41 : vector<8x32xf32>
    %58 = arith.mulf %50, %57 : vector<8x32xf32>
    %59 = arith.addf %41, %58 : vector<8x32xf32>
    %cst_26 = arith.constant dense<0.000000e+00> : vector<8x384xf32>
    %60 = tpu.matmul %59, %5, %cst_26 {dimension_numbers = #tpu.dot_dimension_numbers<[1], [0], [0], [1], [0, 0, 1, 1], [], []>} : vector<8x32xf32>, vector<32x384xf32>, vector<8x384xf32> -> vector<8x384xf32>
    %61 = vector.broadcast %10 : vector<1x384xf32> to vector<8x384xf32>
    %62 = arith.addf %60, %61 : vector<8x384xf32>
    %63 = vector.extract_strided_slice %24 {offsets = [16, 0], sizes = [8, 32], strides = [1, 1]} : vector<64x32xf32> to vector<8x32xf32>
    %64 = arith.mulf %63, %59 : vector<8x32xf32>
    %cst_27 = arith.constant dense<0.000000e+00> : vector<8x256xf32>
    %65 = tpu.matmul %64, %3, %cst_27 {dimension_numbers = #tpu.dot_dimension_numbers<[1], [0], [0], [1], [0, 0, 1, 1], [], []>} : vector<8x32xf32>, vector<32x256xf32>, vector<8x256xf32> -> vector<8x256xf32>
    %66 = vector.extract_strided_slice %62 {offsets = [0, 0], sizes = [8, 256], strides = [1, 1]} : vector<8x384xf32> to vector<8x256xf32>
    %67 = arith.addf %65, %66 : vector<8x256xf32>
    %68 = arith.negf %67 : vector<8x256xf32>
    %69 = math.exp %68 : vector<8x256xf32>
    %cst_28 = arith.constant 1.000000e+00 : f32
    %70 = vector.broadcast %cst_28 : f32 to vector<8x256xf32>
    %71 = arith.addf %70, %69 : vector<8x256xf32>
    %72 = arith.divf %70, %71 : vector<8x256xf32>
    %73 = vector.extract_strided_slice %72 {offsets = [0, 0], sizes = [8, 32], strides = [1, 1]} : vector<8x256xf32> to vector<8x32xf32>
    %74 = vector.extract_strided_slice %72 {offsets = [0, 128], sizes = [8, 32], strides = [1, 1]} : vector<8x256xf32> to vector<8x32xf32>
    %75 = arith.mulf %74, %64 : vector<8x32xf32>
    %cst_29 = arith.constant dense<0.000000e+00> : vector<8x32xf32>
    %76 = tpu.matmul %75, %4, %cst_29 {dimension_numbers = #tpu.dot_dimension_numbers<[1], [0], [0], [1], [0, 0, 1, 1], [], []>} : vector<8x32xf32>, vector<32x32xf32>, vector<8x32xf32> -> vector<8x32xf32>
    %77 = vector.extract_strided_slice %62 {offsets = [0, 256], sizes = [8, 32], strides = [1, 1]} : vector<8x384xf32> to vector<8x32xf32>
    %78 = arith.addf %76, %77 : vector<8x32xf32>
    %79 = math.tanh %78 : vector<8x32xf32>
    %80 = arith.subf %79, %64 : vector<8x32xf32>
    %81 = arith.mulf %73, %80 : vector<8x32xf32>
    %82 = arith.addf %64, %81 : vector<8x32xf32>
    %cst_30 = arith.constant dense<0.000000e+00> : vector<8x384xf32>
    %83 = tpu.matmul %82, %5, %cst_30 {dimension_numbers = #tpu.dot_dimension_numbers<[1], [0], [0], [1], [0, 0, 1, 1], [], []>} : vector<8x32xf32>, vector<32x384xf32>, vector<8x384xf32> -> vector<8x384xf32>
    %84 = vector.broadcast %10 : vector<1x384xf32> to vector<8x384xf32>
    %85 = arith.addf %83, %84 : vector<8x384xf32>
    %86 = vector.extract_strided_slice %24 {offsets = [24, 0], sizes = [8, 32], strides = [1, 1]} : vector<64x32xf32> to vector<8x32xf32>
    %87 = arith.mulf %86, %82 : vector<8x32xf32>
    %cst_31 = arith.constant dense<0.000000e+00> : vector<8x256xf32>
    %88 = tpu.matmul %87, %3, %cst_31 {dimension_numbers = #tpu.dot_dimension_numbers<[1], [0], [0], [1], [0, 0, 1, 1], [], []>} : vector<8x32xf32>, vector<32x256xf32>, vector<8x256xf32> -> vector<8x256xf32>
    %89 = vector.extract_strided_slice %85 {offsets = [0, 0], sizes = [8, 256], strides = [1, 1]} : vector<8x384xf32> to vector<8x256xf32>
    %90 = arith.addf %88, %89 : vector<8x256xf32>
    %91 = arith.negf %90 : vector<8x256xf32>
    %92 = math.exp %91 : vector<8x256xf32>
    %cst_32 = arith.constant 1.000000e+00 : f32
    %93 = vector.broadcast %cst_32 : f32 to vector<8x256xf32>
    %94 = arith.addf %93, %92 : vector<8x256xf32>
    %95 = arith.divf %93, %94 : vector<8x256xf32>
    %96 = vector.extract_strided_slice %95 {offsets = [0, 0], sizes = [8, 32], strides = [1, 1]} : vector<8x256xf32> to vector<8x32xf32>
    %97 = vector.extract_strided_slice %95 {offsets = [0, 128], sizes = [8, 32], strides = [1, 1]} : vector<8x256xf32> to vector<8x32xf32>
    %98 = arith.mulf %97, %87 : vector<8x32xf32>
    %cst_33 = arith.constant dense<0.000000e+00> : vector<8x32xf32>
    %99 = tpu.matmul %98, %4, %cst_33 {dimension_numbers = #tpu.dot_dimension_numbers<[1], [0], [0], [1], [0, 0, 1, 1], [], []>} : vector<8x32xf32>, vector<32x32xf32>, vector<8x32xf32> -> vector<8x32xf32>
    %100 = vector.extract_strided_slice %85 {offsets = [0, 256], sizes = [8, 32], strides = [1, 1]} : vector<8x384xf32> to vector<8x32xf32>
    %101 = arith.addf %99, %100 : vector<8x32xf32>
    %102 = math.tanh %101 : vector<8x32xf32>
    %103 = arith.subf %102, %87 : vector<8x32xf32>
    %104 = arith.mulf %96, %103 : vector<8x32xf32>
    %105 = arith.addf %87, %104 : vector<8x32xf32>
    %cst_34 = arith.constant dense<0.000000e+00> : vector<8x384xf32>
    %106 = tpu.matmul %105, %5, %cst_34 {dimension_numbers = #tpu.dot_dimension_numbers<[1], [0], [0], [1], [0, 0, 1, 1], [], []>} : vector<8x32xf32>, vector<32x384xf32>, vector<8x384xf32> -> vector<8x384xf32>
    %107 = vector.broadcast %10 : vector<1x384xf32> to vector<8x384xf32>
    %108 = arith.addf %106, %107 : vector<8x384xf32>
    %109 = vector.extract_strided_slice %24 {offsets = [32, 0], sizes = [8, 32], strides = [1, 1]} : vector<64x32xf32> to vector<8x32xf32>
    %110 = arith.mulf %109, %105 : vector<8x32xf32>
    %cst_35 = arith.constant dense<0.000000e+00> : vector<8x256xf32>
    %111 = tpu.matmul %110, %3, %cst_35 {dimension_numbers = #tpu.dot_dimension_numbers<[1], [0], [0], [1], [0, 0, 1, 1], [], []>} : vector<8x32xf32>, vector<32x256xf32>, vector<8x256xf32> -> vector<8x256xf32>
    %112 = vector.extract_strided_slice %108 {offsets = [0, 0], sizes = [8, 256], strides = [1, 1]} : vector<8x384xf32> to vector<8x256xf32>
    %113 = arith.addf %111, %112 : vector<8x256xf32>
    %114 = arith.negf %113 : vector<8x256xf32>
    %115 = math.exp %114 : vector<8x256xf32>
    %cst_36 = arith.constant 1.000000e+00 : f32
    %116 = vector.broadcast %cst_36 : f32 to vector<8x256xf32>
    %117 = arith.addf %116, %115 : vector<8x256xf32>
    %118 = arith.divf %116, %117 : vector<8x256xf32>
    %119 = vector.extract_strided_slice %118 {offsets = [0, 0], sizes = [8, 32], strides = [1, 1]} : vector<8x256xf32> to vector<8x32xf32>
    %120 = vector.extract_strided_slice %118 {offsets = [0, 128], sizes = [8, 32], strides = [1, 1]} : vector<8x256xf32> to vector<8x32xf32>
    %121 = arith.mulf %120, %110 : vector<8x32xf32>
    %cst_37 = arith.constant dense<0.000000e+00> : vector<8x32xf32>
    %122 = tpu.matmul %121, %4, %cst_37 {dimension_numbers = #tpu.dot_dimension_numbers<[1], [0], [0], [1], [0, 0, 1, 1], [], []>} : vector<8x32xf32>, vector<32x32xf32>, vector<8x32xf32> -> vector<8x32xf32>
    %123 = vector.extract_strided_slice %108 {offsets = [0, 256], sizes = [8, 32], strides = [1, 1]} : vector<8x384xf32> to vector<8x32xf32>
    %124 = arith.addf %122, %123 : vector<8x32xf32>
    %125 = math.tanh %124 : vector<8x32xf32>
    %126 = arith.subf %125, %110 : vector<8x32xf32>
    %127 = arith.mulf %119, %126 : vector<8x32xf32>
    %128 = arith.addf %110, %127 : vector<8x32xf32>
    %cst_38 = arith.constant dense<0.000000e+00> : vector<8x384xf32>
    %129 = tpu.matmul %128, %5, %cst_38 {dimension_numbers = #tpu.dot_dimension_numbers<[1], [0], [0], [1], [0, 0, 1, 1], [], []>} : vector<8x32xf32>, vector<32x384xf32>, vector<8x384xf32> -> vector<8x384xf32>
    %130 = vector.broadcast %10 : vector<1x384xf32> to vector<8x384xf32>
    %131 = arith.addf %129, %130 : vector<8x384xf32>
    %132 = vector.extract_strided_slice %24 {offsets = [40, 0], sizes = [8, 32], strides = [1, 1]} : vector<64x32xf32> to vector<8x32xf32>
    %133 = arith.mulf %132, %128 : vector<8x32xf32>
    %cst_39 = arith.constant dense<0.000000e+00> : vector<8x256xf32>
    %134 = tpu.matmul %133, %3, %cst_39 {dimension_numbers = #tpu.dot_dimension_numbers<[1], [0], [0], [1], [0, 0, 1, 1], [], []>} : vector<8x32xf32>, vector<32x256xf32>, vector<8x256xf32> -> vector<8x256xf32>
    %135 = vector.extract_strided_slice %131 {offsets = [0, 0], sizes = [8, 256], strides = [1, 1]} : vector<8x384xf32> to vector<8x256xf32>
    %136 = arith.addf %134, %135 : vector<8x256xf32>
    %137 = arith.negf %136 : vector<8x256xf32>
    %138 = math.exp %137 : vector<8x256xf32>
    %cst_40 = arith.constant 1.000000e+00 : f32
    %139 = vector.broadcast %cst_40 : f32 to vector<8x256xf32>
    %140 = arith.addf %139, %138 : vector<8x256xf32>
    %141 = arith.divf %139, %140 : vector<8x256xf32>
    %142 = vector.extract_strided_slice %141 {offsets = [0, 0], sizes = [8, 32], strides = [1, 1]} : vector<8x256xf32> to vector<8x32xf32>
    %143 = vector.extract_strided_slice %141 {offsets = [0, 128], sizes = [8, 32], strides = [1, 1]} : vector<8x256xf32> to vector<8x32xf32>
    %144 = arith.mulf %143, %133 : vector<8x32xf32>
    %cst_41 = arith.constant dense<0.000000e+00> : vector<8x32xf32>
    %145 = tpu.matmul %144, %4, %cst_41 {dimension_numbers = #tpu.dot_dimension_numbers<[1], [0], [0], [1], [0, 0, 1, 1], [], []>} : vector<8x32xf32>, vector<32x32xf32>, vector<8x32xf32> -> vector<8x32xf32>
    %146 = vector.extract_strided_slice %131 {offsets = [0, 256], sizes = [8, 32], strides = [1, 1]} : vector<8x384xf32> to vector<8x32xf32>
    %147 = arith.addf %145, %146 : vector<8x32xf32>
    %148 = math.tanh %147 : vector<8x32xf32>
    %149 = arith.subf %148, %133 : vector<8x32xf32>
    %150 = arith.mulf %142, %149 : vector<8x32xf32>
    %151 = arith.addf %133, %150 : vector<8x32xf32>
    %cst_42 = arith.constant dense<0.000000e+00> : vector<8x384xf32>
    %152 = tpu.matmul %151, %5, %cst_42 {dimension_numbers = #tpu.dot_dimension_numbers<[1], [0], [0], [1], [0, 0, 1, 1], [], []>} : vector<8x32xf32>, vector<32x384xf32>, vector<8x384xf32> -> vector<8x384xf32>
    %153 = vector.broadcast %10 : vector<1x384xf32> to vector<8x384xf32>
    %154 = arith.addf %152, %153 : vector<8x384xf32>
    %155 = vector.extract_strided_slice %24 {offsets = [48, 0], sizes = [8, 32], strides = [1, 1]} : vector<64x32xf32> to vector<8x32xf32>
    %156 = arith.mulf %155, %151 : vector<8x32xf32>
    %cst_43 = arith.constant dense<0.000000e+00> : vector<8x256xf32>
    %157 = tpu.matmul %156, %3, %cst_43 {dimension_numbers = #tpu.dot_dimension_numbers<[1], [0], [0], [1], [0, 0, 1, 1], [], []>} : vector<8x32xf32>, vector<32x256xf32>, vector<8x256xf32> -> vector<8x256xf32>
    %158 = vector.extract_strided_slice %154 {offsets = [0, 0], sizes = [8, 256], strides = [1, 1]} : vector<8x384xf32> to vector<8x256xf32>
    %159 = arith.addf %157, %158 : vector<8x256xf32>
    %160 = arith.negf %159 : vector<8x256xf32>
    %161 = math.exp %160 : vector<8x256xf32>
    %cst_44 = arith.constant 1.000000e+00 : f32
    %162 = vector.broadcast %cst_44 : f32 to vector<8x256xf32>
    %163 = arith.addf %162, %161 : vector<8x256xf32>
    %164 = arith.divf %162, %163 : vector<8x256xf32>
    %165 = vector.extract_strided_slice %164 {offsets = [0, 0], sizes = [8, 32], strides = [1, 1]} : vector<8x256xf32> to vector<8x32xf32>
    %166 = vector.extract_strided_slice %164 {offsets = [0, 128], sizes = [8, 32], strides = [1, 1]} : vector<8x256xf32> to vector<8x32xf32>
    %167 = arith.mulf %166, %156 : vector<8x32xf32>
    %cst_45 = arith.constant dense<0.000000e+00> : vector<8x32xf32>
    %168 = tpu.matmul %167, %4, %cst_45 {dimension_numbers = #tpu.dot_dimension_numbers<[1], [0], [0], [1], [0, 0, 1, 1], [], []>} : vector<8x32xf32>, vector<32x32xf32>, vector<8x32xf32> -> vector<8x32xf32>
    %169 = vector.extract_strided_slice %154 {offsets = [0, 256], sizes = [8, 32], strides = [1, 1]} : vector<8x384xf32> to vector<8x32xf32>
    %170 = arith.addf %168, %169 : vector<8x32xf32>
    %171 = math.tanh %170 : vector<8x32xf32>
    %172 = arith.subf %171, %156 : vector<8x32xf32>
    %173 = arith.mulf %165, %172 : vector<8x32xf32>
    %174 = arith.addf %156, %173 : vector<8x32xf32>
    %cst_46 = arith.constant dense<0.000000e+00> : vector<8x384xf32>
    %175 = tpu.matmul %174, %5, %cst_46 {dimension_numbers = #tpu.dot_dimension_numbers<[1], [0], [0], [1], [0, 0, 1, 1], [], []>} : vector<8x32xf32>, vector<32x384xf32>, vector<8x384xf32> -> vector<8x384xf32>
    %176 = vector.broadcast %10 : vector<1x384xf32> to vector<8x384xf32>
    %177 = arith.addf %175, %176 : vector<8x384xf32>
    %178 = vector.extract_strided_slice %24 {offsets = [56, 0], sizes = [8, 32], strides = [1, 1]} : vector<64x32xf32> to vector<8x32xf32>
    %179 = arith.mulf %178, %174 : vector<8x32xf32>
    %cst_47 = arith.constant dense<0.000000e+00> : vector<8x256xf32>
    %180 = tpu.matmul %179, %3, %cst_47 {dimension_numbers = #tpu.dot_dimension_numbers<[1], [0], [0], [1], [0, 0, 1, 1], [], []>} : vector<8x32xf32>, vector<32x256xf32>, vector<8x256xf32> -> vector<8x256xf32>
    %181 = vector.extract_strided_slice %177 {offsets = [0, 0], sizes = [8, 256], strides = [1, 1]} : vector<8x384xf32> to vector<8x256xf32>
    %182 = arith.addf %180, %181 : vector<8x256xf32>
    %183 = arith.negf %182 : vector<8x256xf32>
    %184 = math.exp %183 : vector<8x256xf32>
    %cst_48 = arith.constant 1.000000e+00 : f32
    %185 = vector.broadcast %cst_48 : f32 to vector<8x256xf32>
    %186 = arith.addf %185, %184 : vector<8x256xf32>
    %187 = arith.divf %185, %186 : vector<8x256xf32>
    %188 = vector.extract_strided_slice %187 {offsets = [0, 0], sizes = [8, 32], strides = [1, 1]} : vector<8x256xf32> to vector<8x32xf32>
    %189 = vector.extract_strided_slice %187 {offsets = [0, 128], sizes = [8, 32], strides = [1, 1]} : vector<8x256xf32> to vector<8x32xf32>
    %190 = arith.mulf %189, %179 : vector<8x32xf32>
    %cst_49 = arith.constant dense<0.000000e+00> : vector<8x32xf32>
    %191 = tpu.matmul %190, %4, %cst_49 {dimension_numbers = #tpu.dot_dimension_numbers<[1], [0], [0], [1], [0, 0, 1, 1], [], []>} : vector<8x32xf32>, vector<32x32xf32>, vector<8x32xf32> -> vector<8x32xf32>
    %192 = vector.extract_strided_slice %177 {offsets = [0, 256], sizes = [8, 32], strides = [1, 1]} : vector<8x384xf32> to vector<8x32xf32>
    %193 = arith.addf %191, %192 : vector<8x32xf32>
    %194 = math.tanh %193 : vector<8x32xf32>
    %195 = arith.subf %194, %179 : vector<8x32xf32>
    %196 = arith.mulf %188, %195 : vector<8x32xf32>
    %197 = arith.addf %179, %196 : vector<8x32xf32>
    %198 = tpu.concatenate %36, %59, %82, %105, %128, %151, %174, %197 in 0 : vector<8x32xf32>, vector<8x32xf32>, vector<8x32xf32>, vector<8x32xf32>, vector<8x32xf32>, vector<8x32xf32>, vector<8x32xf32>, vector<8x32xf32> -> vector<64x32xf32>
    %cst_50 = arith.constant dense<0.000000e+00> : vector<64x128xf32>
    %199 = tpu.matmul %198, %6, %cst_50 {dimension_numbers = #tpu.dot_dimension_numbers<[1], [0], [0], [1], [0, 0, 1, 1], [], []>} : vector<64x32xf32>, vector<32x128xf32>, vector<64x128xf32> -> vector<64x128xf32>
    %200 = vector.broadcast %11 : vector<1x128xf32> to vector<64x128xf32>
    %201 = arith.addf %199, %200 : vector<64x128xf32>
    %c0_51 = arith.constant 0 : index
    %c0_52 = arith.constant 0 : index
    %202 = vector.load %arg4[%c0_51, %c0_52] : memref<64x128xf32, #tpu.memory_space<vmem>>, vector<64x128xf32>
    tpu.vector_store %arg4[%c0_51, %c0_52], %201 {strides = array<i32>} : memref<64x128xf32, #tpu.memory_space<vmem>>, vector<64x128xf32>,
    return
  }
}

</mosaic_0001>

<bundles_post_ra>
// kernel: generator_z2seq_pallas.1
= control target key start
LH: loop header
LB: loop body
LE: loop exit
PB: predicated region body
PF: predicated region fallthrough
CT: control target
= control target key end

     0   :  { %9 = vsyncpa [#allocation3], 0  ;;  %s1763_s18 = smov [#allocation2]   ;;  %s1764_s20 = smov 384   ;;  %s2279_s0 = inlined_call_operand.vmem [shape: f32[8,8], index: 0, kind: input, shape index: {}]   ;;  %s2280_s1 = inlined_call_operand.vmem [shape: f32[64,16], index: 1, kind: input, shape index: {}]   ;;  %s2281_s2 = inlined_call_operand.hbm [shape: f32[168,384], index: 2, kind: input, shape index: {}]   ;;  %s2282_s3 = inlined_call_operand.vmem [shape: f32[5,384], index: 3, kind: input, shape index: {}]   ;;  %s2283_s4 = inlined_call_operand.vmem [shape: f32[64,128], index: 4, kind: output, shape index: {}]  }
   0x1   :  { %s18_s17 = sshll.u32 %s2281_s2, 4  ;;  %s20_s19 = sshll.u32 %s1763_s18, 4  ;;  %s19_s17 = int_to_ptr.hbm [resolvable:$true] %s18_s17  ;;  %s21_s19 = int_to_ptr.vmem [resolvable:$true] %s20_s19 }
   0x2   :  { %s1765_s21 = smov 24  }
   0x3   :  { %26 = dma.hbm_to_vmem [thread:$0]  %s19_s17, 8064, %s21_s19, [#allocation3], %s1764_s20, %s1764_s20, %s1765_s21  }
   0x4   :  { %1761 = dma.done.wait [#allocation3], 8064  }
   0x5   :  { %1762 = vsyncadd [#allocation3], 4294959232  ;;  %vm76_vm0 = vcmask 64512   ;;  %v33_v0 = vld [vmem:[#allocation2] sm:$0xff]  ;;  %v35_v2 = vld [vmem:[#allocation2 + $0x30] sm:$0xff]  ;;  %vm108_vm1 = vcmask 130048  }
   0x6   :  { %v75_v1 = vld [vmem:[%s2279_s0] sm:$0xff]  ;;  %95 = vmatpush.msra.mxu0 %v33_v0  ;;  %1625 = vmatpush.msra.mxu3 %v35_v2  ;;  %v34_v3 = vld [vmem:[#allocation2 + $0x18] sm:$0xff]  ;;  %v106_v4 = vld [vmem:[%s2280_s1 + $0x30] sm:$0xff]  ;;  %vm277_vm6 = vcmask 261120  }
   0x7   :  { %1548 = vmatmul.msk.f32.vlgmr.msra.gmra.mxu0 %vm76_vm0, %v75_v1  ;;  %v38_v5 = vld [vmem:[#allocation2 + $0x60] sm:$0xff]  ;;  %v36_v6 = vld [vmem:[#allocation2 + $0x48] sm:$0xff]  ;;  %147 = vmatpush.msra.mxu1 %v35_v2  ;;  %v107_v7 = vld [vmem:[%s2280_s1 + $0x38] sm:$0xff] }
   0x8   :  { %1627 = vmatpush.msra.mxu3 %v34_v3  ;;  %223 = vmatpush.msrb.mxu0 %v38_v5  ;;  %v39_v8 = vld [vmem:[#allocation2 + $0x70] sm:$0xff]  ;;  %v37_v9 = vld [vmem:[#allocation2 + $0x58] sm:$0xff]  ;;  %v100_v10 = vld [vmem:[%s2280_s1] sm:$0xff] }
   0x9   :  { %1555 = vmatmul.msk.f32.vlgmr.msra.gmra.mxu3 %vm108_vm1, %v106_v4  ;;  %148 = vmatpush.msra.mxu1 %v34_v3  ;;  %v101_v11 = vld [vmem:[%s2280_s1 + $0x8] sm:$0xff]  ;;  %v68_v12 = vld [vmem:[%s2282_s3] ss:$0 sm:$0xff]  ;;  %v103_v16 = vld [vmem:[%s2280_s1 + $0x18] sm:$0xff] }
   0xa   :  { %224 = vmatpush.msrb.mxu0 %v36_v6  ;;  %1624 = vmatpush.msra.mxu2 %v35_v2  ;;  %v104_v17 = vld [vmem:[%s2280_s1 + $0x20] sm:$0xff]  ;;  %v105_v18 = vld [vmem:[%s2280_s1 + $0x28] sm:$0xff]  ;;  %v1834_v21 = vld [vmem:[#allocation2 + $0x190] sm:$0xff] }
   0xb   :  { %243 = vmatpush.msrb.mxu3 %v39_v8  ;;  %1549 = vmatmul.msk.f32.vlgmr.msra.gmra.mxu1 %vm108_vm1, %v100_v10  ;;  %v1829_v19 = vld [vmem:[#allocation2 + $0x188] sm:$0xff]  ;;  %v1832_v20 = vld [vmem:[#allocation2 + $0x180] sm:$0xff]  ;;  %v1843_v23 = vld [vmem:[#allocation2 + $0x170] sm:$0xff] }
   0xc   :  { %1626 = vmatpush.msra.mxu2 %v34_v3  ;;  %v1839_v22 = vld [vmem:[%s2282_s3 + $0x2] ss:$8 sm:$0x7]  ;;  %293 = vmatpush.msra.mxu0 %v1832_v20  ;;  %v1848_v25 = vld [vmem:[#allocation2 + $0x178] sm:$0xff]  ;;  %v1911_v49 = vld [vmem:[%s2282_s3 + $0x1] ss:$0 sm:$0xff] }
   0xd   :  { %244 = vmatpush.msrb.mxu3 %v37_v9  ;;  %1552 = vmatmul.msk.f32.vlgmr.msra.gmra.mxu2 %vm108_vm1, %v103_v16  ;;  %v1846_v24 = vld [vmem:[#allocation2 + $0x168] sm:$0xff]  ;;  %v202_v27 = vperm.slane %v1839_v22, 0  ;;  %v1856_v28 = vld [vmem:[#allocation2 + $0x158] sm:$0xff]  ;;  %v1859_v29 = vld [vmem:[#allocation2 + $0x150] sm:$0xff]  ;;  %v203_v51 = vperm.slane %v1839_v22, 2 }
   0xe   :  { %313 = vmatpush.msrb.mxu2 %v1829_v19  ;;  %1025 = vmatpush.msrb.mxu1 %v1834_v21  ;;  %v1861_v30 = vld [vmem:[#allocation2 + $0x160] sm:$0xff]  ;;  %v1869_v32 = vld [vmem:[#allocation2 + $0x138] sm:$0xff]  ;;  %v1871_v33 = vld [vmem:[#allocation2 + $0x148] sm:$0xff] }
   0xf   :  { %333 = vmatpush.msra.mxu3 %v1834_v21  ;;  %294 = vmatpush.msra.mxu0 %v1846_v24  ;;  %v1866_v31 = vld [vmem:[#allocation2 + $0x140] sm:$0xff]  ;;  %v1878_v36 = vld [vmem:[#allocation2 + $0xc8] sm:$0xff]  ;;  %v1882_v38 = vld [vmem:[#allocation2 + $0xb0] sm:$0xff] }
  0x10   :  { %314 = vmatpush.msrb.mxu2 %v1843_v23  ;;  %1026 = vmatpush.msrb.mxu1 %v1848_v25  ;;  %v1880_v37 = vld [vmem:[#allocation2 + $0xc0] sm:$0xff]  ;;  %v1887_v40 = vld [vmem:[#allocation2 + $0xa8] sm:$0xff]  ;;  %v1889_v41 = vld [vmem:[#allocation2 + $0x98] sm:$0xff] }
  0x11   :  { %1556 = vmatmul.msk.f32.gmra.mxu3 %vm108_vm1, %v107_v7  ;;  %295 = vmatpush.msra.mxu0 %v1859_v29  ;;  %v1891_v42 = vld [vmem:[#allocation2 + $0x90] sm:$0xff]  ;;  %v1896_v43 = vld [vmem:[#allocation2 + $0x80] sm:$0xff]  ;;  %v1898_v44 = vld [vmem:[#allocation2 + $0x78] sm:$0xff] }
  0x12   :  { %334 = vmatpush.msra.mxu3 %v1848_v25  ;;  %315 = vmatpush.msrb.mxu2 %v1856_v28  ;;  %v1965_v16 = vld [vmem:[#allocation2 + $0xd8] sm:$0xff] }
  0x13   :  { %1550 = vmatmul.msk.f32.gmra.mxu1 %vm108_vm1, %v101_v11  ;;  %296 = vmatpush.msra.mxu0 %v1869_v32  ;;  %v1952_v11 = vld [vmem:[#allocation2 + $0x120] sm:$0xff] }
  0x14   :  { %335 = vmatpush.msra.mxu3 %v1861_v30  ;;  %1027 = vmatpush.msrb.mxu1 %v1861_v30 }
  0x15   :  { %1553 = vmatmul.msk.f32.gmra.mxu2 %vm108_vm1, %v104_v17 }
  0x16   :  { %316 = vmatpush.msrb.mxu2 %v1866_v31  ;;  %336 = vmatpush.msra.mxu3 %v1871_v33 }
  0x17   :  { %1028 = vmatpush.msrb.mxu1 %v1871_v33 }
  0x18   :  { %377 = vmatpush.msra.mxu2 %v1878_v36 }
  0x19   :  { %1158 = vmatpush.msra.mxu1 %v1832_v20 }
  0x1a   :  { %378 = vmatpush.msra.mxu2 %v1882_v38 }
  0x1b   :  { %1159 = vmatpush.msra.mxu1 %v1846_v24 }
  0x1c   :  { %379 = vmatpush.msra.mxu2 %v1889_v41 }
  0x1d   :  { %1554 = vmatmul.msk.f32.gmra.mxu2 %vm108_vm1, %v105_v18  ;;  %1160 = vmatpush.msra.mxu1 %v1859_v29 }
  0x1e   :  { %380 = vmatpush.msra.mxu2 %v1896_v43 }
  0x1f   :  { %1161 = vmatpush.msra.mxu1 %v1869_v32 }
  0x84   :  { %v97_v13 = vpop.f32.mrf.mxu0 }
  0x85   :  { %v98_v14 = vadd.f32 %v97_v13, %v68_v12  ;;  %v1954_v12 = vld [vmem:[#allocation2 + $0x108] sm:$0xff] }
  0x86   :  { %v1547_v13 = vld [vmem:[%s2282_s3 + $0x3] ss:$8 sm:$0x7] }
  0x87   :  { %1557 = vmatmul.msk.f32.vlgmr.msrb.gmra.mxu0 %vm108_vm1, %v98_v14  ;;  %1558 = vmatmul.msk.f32.vlgmr.msrb.gmra.mxu3 %vm108_vm1, %v98_v14  ;;  %v1960_v14 = vperm.slane %v1547_v13, 1 }
  0x88   :  { %v150_v15 = vpop.f32.mrf.mxu1  ;;  %357 = vmatpush.msrb.mxu0 %v1880_v37  ;;  %439 = vmatpush.msrb.mxu3 %v1952_v11 }
  0x89   :  { %v1962_v15 = vld [vmem:[#allocation2 + $0xf0] sm:$0xff] }
  0x8a   :  { %358 = vmatpush.msrb.mxu0 %v1887_v40  ;;  %440 = vmatpush.msrb.mxu3 %v1954_v12 }
  0x8c   :  { %v1853_v26 = vpop.f32.mrf.mxu3  ;;  %359 = vmatpush.msrb.mxu0 %v1891_v42  ;;  %441 = vmatpush.msrb.mxu3 %v1962_v15 }
  0x8e   :  { %360 = vmatpush.msrb.mxu0 %v1898_v44  ;;  %442 = vmatpush.msrb.mxu3 %v1965_v16 }
  0x90   :  { %v152_v47 = vpop.f32.mrf.mxu1  ;;  %v1946_v7 = vpop.f32.mrf.mxu2 }
  0x91   :  { %v153_v50 = vadd.f32 %v152_v47, %v1911_v49 }
  0x93   :  { %v173_v53 = vmax.f32 %v153_v50, 0.0 }
  0x94   :  { %v1901_v45 = vpop.f32.mrf.mxu3 }
  0x95   :  { %v180_v57 = vsub.f32 0.0, %v173_v53 }
  0x97   :  { %v187_v62 = vmul.f32 1.442695, %v180_v57 }
  0x98   :  { %v1948_v8 = vpop.f32.mrf.mxu2 }
  0xa0   :  { %v1950_v9 = vpop.f32.mrf.mxu2 }
 0x104   :  { %v226_v34 = vpop.f32.mrf.mxu0 }
 0x105   :  { %v227_v35 = vadd.f32 %v226_v34, %v202_v27  ;;  %v102_v27 = vld [vmem:[%s2280_s1 + $0x10] sm:$0xff] }
 0x106   :  { %1551 = vmatmul.msk.f32.gmra.mxu1 %vm108_vm1, %v102_v27 }
 0x107   :  { %v1559_v39 = vmul.f32 -1.442695, %v227_v35 }
 0x109   :  { %1631 = vpow2.f32 %v1559_v39 }
 0x10a   :  { %v246_v52 = vpop.f32.mrf.mxu3 }
 0x10b   :  { %v247_v55 = vadd.f32 %v246_v52, %v203_v51 }
 0x10f   :  { %v1632_v46 = vpop.eup %1631 }
 0x110   :  { %v252_v48 = vadd.f32 1.0, %v1632_v46 }
 0x112   :  { %1633 = vrcp.f32 %v252_v48  ;;  %v264_v59 = vand.u32 2147483648, %v252_v48  ;;  %v262_v61 = vand.u32 2147483647, %v252_v48  ;;  %vm258_vm3 = vweird.f32 %v252_v48 }
 0x113   :  { %1635 = vtanh.f32 %v247_v55 }
 0x114   :  { %v265_v0 = vor.u32 1.1754944e-38, %v264_v59  ;;  %vm263_vm5 = vcmp.eq.f32.partialorder %v262_v61, 8.507059e+37  ;;  %1637 = vpow2.f32 %v187_v62  ;;  %v1984_v59 = vperm.slane %v1547_v13, 0 }
 0x118   :  { %v1634_v54 = vpop.eup %1633 }
 0x119   :  { %v254_v56 = vmul.f32 %v1634_v54, %v252_v48  ;;  %vm259_vm2 = vweird.f32 %v1634_v54  ;;  %v1636_v2 = vpop.eup %1635 }
 0x11a   :  { %vm260_vm4 = vmor %vm258_vm3, %vm259_vm2  ;;  %v1638_v5 = vpop.eup %1637 }
 0x11b   :  { %v255_v58 = vsub.f32 1.0, %v254_v56 }
 0x11d   :  { %v256_v60 = vmul.f32 %v1634_v54, %v255_v58 }
 0x11f   :  { %v257_v63 = vadd.f32 %v1634_v54, %v256_v60 }
 0x121   :  { %v261_v1 = vsel %vm260_vm4, %v1634_v54, %v257_v63 }
 0x122   :  { %v266_v3 = vsel %vm263_vm5, %v265_v0, %v261_v1 }
 0x123   :  { %v1915_v4 = vmul.f32 %v1636_v2, %v266_v3 }
 0x125   :  { %1560 = vmatmul.msk.f32.vlgmr.msra.gmra.mxu0 %vm277_vm6, %v1915_v4  ;;  %1561 = vmatmul.msk.f32.vlgmr.msrb.gmra.mxu2 %vm277_vm6, %v1915_v4  ;;  %v1929_v6 = vmul.f32 %v1638_v5, %v1915_v4 }
 0x126   :  { %1562 = vmatmul.msk.f32.vlgmr.msra.gmra.mxu3 %vm277_vm6, %v1915_v4  ;;  %486 = vmatpush.msrb.mxu2 %v1829_v19 }
 0x127   :  { %466 = vmatpush.msra.mxu0 %v1832_v20  ;;  %506 = vmatpush.msra.mxu3 %v1834_v21 }
 0x128   :  { %487 = vmatpush.msrb.mxu2 %v1843_v23 }
 0x129   :  { %467 = vmatpush.msra.mxu0 %v1846_v24  ;;  %507 = vmatpush.msra.mxu3 %v1848_v25 }
 0x12a   :  { %488 = vmatpush.msrb.mxu2 %v1856_v28 }
 0x12b   :  { %468 = vmatpush.msra.mxu0 %v1859_v29  ;;  %508 = vmatpush.msra.mxu3 %v1861_v30 }
 0x12c   :  { %489 = vmatpush.msrb.mxu2 %v1866_v31 }
 0x12d   :  { %1563 = vmatmul.msk.f32.vlgmr.msrb.gmra.mxu0 %vm277_vm6, %v1929_v6  ;;  %1564 = vmatmul.msk.f32.vlgmr.msra.gmra.mxu2 %vm277_vm6, %v1929_v6 }
 0x12e   :  { %469 = vmatpush.msra.mxu0 %v1869_v32  ;;  %550 = vmatpush.msra.mxu2 %v1878_v36 }
 0x12f   :  { %509 = vmatpush.msra.mxu3 %v1871_v33 }
 0x130   :  { %530 = vmatpush.msrb.mxu0 %v1880_v37  ;;  %551 = vmatpush.msra.mxu2 %v1882_v38 }
 0x132   :  { %531 = vmatpush.msrb.mxu0 %v1887_v40  ;;  %552 = vmatpush.msra.mxu2 %v1889_v41 }
 0x134   :  { %532 = vmatpush.msrb.mxu0 %v1891_v42  ;;  %553 = vmatpush.msra.mxu2 %v1896_v43 }
 0x136   :  { %533 = vmatpush.msrb.mxu0 %v1898_v44 }
 0x1a2   :  { %v298_v58 = vpop.f32.mrf.mxu0 }
 0x1a3   :  { %v299_v61 = vadd.f32 %v298_v58, %v1984_v59 }
 0x1a8   :  { %v318_v10 = vpop.f32.mrf.mxu2 }
 0x1a9   :  { %v319_v17 = vadd.f32 %v318_v10, %v1960_v14  ;;  %v338_v3 = vpop.f32.mrf.mxu3  ;;  %v155_v10 = vpop.f32.mrf.mxu1 }
 0x1aa   :  { %v362_v60 = vpop.f32.mrf.mxu0 }
 0x1ab   :  { %v363_v62 = vadd.f32 %v362_v60, %v299_v61 }
 0x1ad   :  { %v1565_v63 = vmul.f32 -1.442695, %v363_v62 }
 0x1b0   :  { %v382_v18 = vpop.f32.mrf.mxu2 }
 0x1b1   :  { %v383_v22 = vadd.f32 %v382_v18, %v319_v17  ;;  %v1987_v17 = vperm.slane %v1547_v13, 2 }
 0x1b3   :  { %v1566_v34 = vmul.f32 -1.442695, %v383_v22  ;;  %v156_v22 = vadd.f32 %v155_v10, %v1911_v49  ;;  %v339_v27 = vadd.f32 %v338_v3, %v1987_v17 }
 0x1b5   :  { %1639 = vpow2.f32 %v1566_v34 }
 0x1bb   :  { %v1640_v35 = vpop.eup %1639 }
 0x1bc   :  { %v392_v39 = vadd.f32 1.0, %v1640_v35 }
 0x1be   :  { %1641 = vrcp.f32 %v392_v39  ;;  %v419_v50 = vand.u32 2147483648, %v392_v39  ;;  %v417_v52 = vand.u32 2147483647, %v392_v39  ;;  %vm413_vm8 = vweird.f32 %v392_v39 }
 0x1bf   :  { %1643 = vpow2.f32 %v1565_v63 }
 0x1c0   :  { %v420_v54 = vor.u32 1.1754944e-38, %v419_v50  ;;  %vm418_vm10 = vcmp.eq.f32.partialorder %v417_v52, 8.507059e+37 }
 0x1c4   :  { %v1642_v46 = vpop.eup %1641 }
 0x1c5   :  { %v409_v47 = vmul.f32 %v1642_v46, %v392_v39  ;;  %vm414_vm7 = vweird.f32 %v1642_v46  ;;  %v1644_v0 = vpop.eup %1643  ;;  %v174_v39 = vmax.f32 %v156_v22, 0.0 }
 0x1c6   :  { %vm415_vm9 = vmor %vm413_vm8, %vm414_vm7  ;;  %v391_v1 = vadd.f32 1.0, %v1644_v0 }
 0x1c7   :  { %v410_v48 = vsub.f32 1.0, %v409_v47  ;;  %v181_v50 = vsub.f32 0.0, %v174_v39 }
 0x1c8   :  { %1645 = vrcp.f32 %v391_v1  ;;  %vm398_vm12 = vweird.f32 %v391_v1 }
 0x1c9   :  { %v411_v51 = vmul.f32 %v1642_v46, %v410_v48  ;;  %v404_v48 = vand.u32 2147483648, %v391_v1 }
 0x1cb   :  { %v412_v53 = vadd.f32 %v1642_v46, %v411_v51  ;;  %v402_v51 = vand.u32 2147483647, %v391_v1 }
 0x1cd   :  { %v416_v55 = vsel %vm415_vm9, %v1642_v46, %v412_v53  ;;  %v189_v53 = vmul.f32 1.442695, %v181_v50  ;;  %vm403_vm14 = vcmp.eq.f32.partialorder %v402_v51, 8.507059e+37 }
 0x1ce   :  { %v421_v56 = vsel %vm418_vm10, %v420_v54, %v416_v55  ;;  %v1646_v2 = vpop.eup %1645  ;;  %v405_v54 = vor.u32 1.1754944e-38, %v404_v48 }
 0x1cf   :  { %v423_v57 = vmul.f32 %v421_v56, %v1929_v6  ;;  %v394_v5 = vmul.f32 %v1646_v2, %v391_v1  ;;  %vm399_vm11 = vweird.f32 %v1646_v2 }
 0x1d0   :  { %vm400_vm13 = vmor %vm398_vm12, %vm399_vm11 }
 0x1d1   :  { %1567 = vmatmul.msk.f32.vlgmr.msrb.gmra.mxu3 %vm277_vm6, %v423_v57  ;;  %v395_v18 = vsub.f32 1.0, %v394_v5 }
 0x1d2   :  { %612 = vmatpush.msrb.mxu3 %v1952_v11 }
 0x1d3   :  { %v396_v34 = vmul.f32 %v1646_v2, %v395_v18 }
 0x1d4   :  { %613 = vmatpush.msrb.mxu3 %v1954_v12 }
 0x1d5   :  { %v397_v47 = vadd.f32 %v1646_v2, %v396_v34 }
 0x1d6   :  { %614 = vmatpush.msrb.mxu3 %v1962_v15 }
 0x1d7   :  { %v401_v52 = vsel %vm400_vm13, %v1646_v2, %v397_v47 }
 0x1d8   :  { %615 = vmatpush.msrb.mxu3 %v1965_v16  ;;  %v406_v56 = vsel %vm403_vm14, %v405_v54, %v401_v52 }
 0x254   :  { %v444_v35 = vpop.f32.mrf.mxu3 }
 0x255   :  { %v445_v46 = vadd.f32 %v444_v35, %v339_v27 }
 0x257   :  { %1647 = vtanh.f32 %v445_v46 }
 0x258   :  { %1649 = vpow2.f32 %v189_v53 }
 0x25d   :  { %v1648_v13 = vpop.eup %1647 }
 0x25e   :  { %v448_v55 = vsub.f32 %v1648_v13, %v1929_v6  ;;  %v1650_v60 = vpop.eup %1649 }
 0x260   :  { %v449_v57 = vmul.f32 %v448_v55, %v406_v56 }
 0x262   :  { %v1993_v58 = vadd.f32 %v449_v57, %v1929_v6 }
 0x264   :  { %1568 = vmatmul.msk.f32.vlgmr.msra.gmra.mxu0 %vm277_vm6, %v1993_v58  ;;  %1569 = vmatmul.msk.f32.vlgmr.msrb.gmra.mxu2 %vm277_vm6, %v1993_v58  ;;  %v2009_v6 = vmul.f32 %v1650_v60, %v1993_v58 }
 0x265   :  { %1570 = vmatmul.msk.f32.vlgmr.msra.gmra.mxu3 %vm277_vm6, %v1993_v58  ;;  %659 = vmatpush.msrb.mxu2 %v1829_v19 }
 0x266   :  { %639 = vmatpush.msra.mxu0 %v1832_v20  ;;  %679 = vmatpush.msra.mxu3 %v1834_v21 }
 0x267   :  { %660 = vmatpush.msrb.mxu2 %v1843_v23 }
 0x268   :  { %640 = vmatpush.msra.mxu0 %v1846_v24  ;;  %680 = vmatpush.msra.mxu3 %v1848_v25 }
 0x269   :  { %661 = vmatpush.msrb.mxu2 %v1856_v28 }
 0x26a   :  { %641 = vmatpush.msra.mxu0 %v1859_v29  ;;  %681 = vmatpush.msra.mxu3 %v1861_v30 }
 0x26b   :  { %662 = vmatpush.msrb.mxu2 %v1866_v31 }
 0x26c   :  { %1571 = vmatmul.msk.f32.vlgmr.msrb.gmra.mxu0 %vm277_vm6, %v2009_v6  ;;  %1572 = vmatmul.msk.f32.vlgmr.msra.gmra.mxu2 %vm277_vm6, %v2009_v6 }
 0x26d   :  { %642 = vmatpush.msra.mxu0 %v1869_v32  ;;  %682 = vmatpush.msra.mxu3 %v1871_v33 }
 0x26e   :  { %723 = vmatpush.msra.mxu2 %v1878_v36 }
 0x26f   :  { %703 = vmatpush.msrb.mxu0 %v1880_v37 }
 0x270   :  { %724 = vmatpush.msra.mxu2 %v1882_v38 }
 0x271   :  { %704 = vmatpush.msrb.mxu0 %v1887_v40 }
 0x272   :  { %725 = vmatpush.msra.mxu2 %v1889_v41 }
 0x273   :  { %705 = vmatpush.msrb.mxu0 %v1891_v42 }
 0x274   :  { %726 = vmatpush.msra.mxu2 %v1896_v43 }
 0x275   :  { %706 = vmatpush.msrb.mxu0 %v1898_v44 }
 0x2e1   :  { %v471_v50 = vpop.f32.mrf.mxu0 }
 0x2e2   :  { %v472_v52 = vadd.f32 %v471_v50, %v1984_v59 }
 0x2e7   :  { %v491_v61 = vpop.f32.mrf.mxu2 }
 0x2e8   :  { %v492_v62 = vadd.f32 %v491_v61, %v1960_v14  ;;  %v511_v57 = vpop.f32.mrf.mxu3 }
 0x2e9   :  { %v535_v51 = vpop.f32.mrf.mxu0 }
 0x2ea   :  { %v536_v13 = vadd.f32 %v535_v51, %v472_v52 }
 0x2ec   :  { %v1573_v53 = vmul.f32 -1.442695, %v536_v13 }
 0x2ef   :  { %v555_v63 = vpop.f32.mrf.mxu2 }
 0x2f0   :  { %v556_v0 = vadd.f32 %v555_v63, %v492_v62  ;;  %v159_v62 = vadd.f32 %v1946_v7, %v1911_v49  ;;  %v512_v63 = vadd.f32 %v511_v57, %v1987_v17 }
 0x2f2   :  { %v1574_v1 = vmul.f32 -1.442695, %v556_v0 }
 0x2f4   :  { %1651 = vpow2.f32 %v1574_v1 }
 0x2fa   :  { %v1652_v2 = vpop.eup %1651 }
 0x2fb   :  { %v565_v3 = vadd.f32 1.0, %v1652_v2 }
 0x2fd   :  { %1653 = vrcp.f32 %v565_v3  ;;  %v592_v22 = vand.u32 2147483648, %v565_v3  ;;  %v590_v34 = vand.u32 2147483647, %v565_v3  ;;  %vm586_vm0 = vweird.f32 %v565_v3 }
 0x2fe   :  { %1655 = vpow2.f32 %v1573_v53 }
 0x2ff   :  { %v593_v39 = vor.u32 1.1754944e-38, %v592_v22  ;;  %vm591_vm2 = vcmp.eq.f32.partialorder %v590_v34, 8.507059e+37 }
 0x303   :  { %v1654_v5 = vpop.eup %1653 }
 0x304   :  { %v582_v10 = vmul.f32 %v1654_v5, %v565_v3  ;;  %vm587_vm15 = vweird.f32 %v1654_v5  ;;  %v1656_v54 = vpop.eup %1655  ;;  %v175_v3 = vmax.f32 %v159_v62, 0.0 }
 0x305   :  { %vm588_vm1 = vmor %vm586_vm0, %vm587_vm15  ;;  %v564_v55 = vadd.f32 1.0, %v1656_v54 }
 0x306   :  { %v583_v18 = vsub.f32 1.0, %v582_v10  ;;  %v182_v22 = vsub.f32 0.0, %v175_v3 }
 0x307   :  { %1657 = vrcp.f32 %v564_v55  ;;  %v577_v10 = vand.u32 2147483648, %v564_v55  ;;  %vm571_vm4 = vweird.f32 %v564_v55 }
 0x308   :  { %v584_v27 = vmul.f32 %v1654_v5, %v583_v18  ;;  %v575_v18 = vand.u32 2147483647, %v564_v55 }
 0x30a   :  { %v585_v35 = vadd.f32 %v1654_v5, %v584_v27  ;;  %vm576_vm7 = vcmp.eq.f32.partialorder %v575_v18, 8.507059e+37 }
 0x30c   :  { %v589_v46 = vsel %vm588_vm1, %v1654_v5, %v585_v35  ;;  %v578_v35 = vor.u32 1.1754944e-38, %v577_v10 }
 0x30d   :  { %v594_v47 = vsel %vm591_vm2, %v593_v39, %v589_v46  ;;  %v1658_v56 = vpop.eup %1657  ;;  %v191_v39 = vmul.f32 1.442695, %v182_v22 }
 0x30e   :  { %v596_v48 = vmul.f32 %v594_v47, %v2009_v6  ;;  %v567_v60 = vmul.f32 %v1658_v56, %v564_v55  ;;  %vm572_vm3 = vweird.f32 %v1658_v56 }
 0x30f   :  { %vm573_vm5 = vmor %vm571_vm4, %vm572_vm3 }
 0x310   :  { %1575 = vmatmul.msk.f32.vlgmr.msrb.gmra.mxu3 %vm277_vm6, %v596_v48  ;;  %v568_v61 = vsub.f32 1.0, %v567_v60 }
 0x311   :  { %785 = vmatpush.msrb.mxu3 %v1952_v11 }
 0x312   :  { %v569_v0 = vmul.f32 %v1658_v56, %v568_v61 }
 0x313   :  { %786 = vmatpush.msrb.mxu3 %v1954_v12 }
 0x314   :  { %v570_v5 = vadd.f32 %v1658_v56, %v569_v0 }
 0x315   :  { %787 = vmatpush.msrb.mxu3 %v1962_v15 }
 0x316   :  { %v574_v27 = vsel %vm573_vm5, %v1658_v56, %v570_v5 }
 0x317   :  { %788 = vmatpush.msrb.mxu3 %v1965_v16  ;;  %v579_v46 = vsel %vm576_vm7, %v578_v35, %v574_v27 }
 0x393   :  { %v617_v1 = vpop.f32.mrf.mxu3 }
 0x394   :  { %v618_v2 = vadd.f32 %v617_v1, %v512_v63 }
 0x396   :  { %1659 = vtanh.f32 %v618_v2 }
 0x397   :  { %1661 = vpow2.f32 %v191_v39 }
 0x39c   :  { %v1660_v34 = vpop.eup %1659 }
 0x39d   :  { %v621_v7 = vsub.f32 %v1660_v34, %v2009_v6 }
 0x39f   :  { %v622_v47 = vmul.f32 %v621_v7, %v579_v46 }
 0x3a1   :  { %v2041_v48 = vadd.f32 %v622_v47, %v2009_v6  ;;  %v1662_v6 = vpop.eup %1661 }
 0x3a3   :  { %1576 = vmatmul.msk.f32.vlgmr.msra.gmra.mxu0 %vm277_vm6, %v2041_v48  ;;  %1577 = vmatmul.msk.f32.vlgmr.msrb.gmra.mxu2 %vm277_vm6, %v2041_v48  ;;  %v2057_v50 = vmul.f32 %v1662_v6, %v2041_v48 }
 0x3a4   :  { %1578 = vmatmul.msk.f32.vlgmr.msra.gmra.mxu3 %vm277_vm6, %v2041_v48  ;;  %812 = vmatpush.msra.mxu0 %v1832_v20 }
 0x3a5   :  { %832 = vmatpush.msrb.mxu2 %v1829_v19  ;;  %852 = vmatpush.msra.mxu3 %v1834_v21 }
 0x3a6   :  { %813 = vmatpush.msra.mxu0 %v1846_v24 }
 0x3a7   :  { %833 = vmatpush.msrb.mxu2 %v1843_v23  ;;  %853 = vmatpush.msra.mxu3 %v1848_v25 }
 0x3a8   :  { %814 = vmatpush.msra.mxu0 %v1859_v29 }
 0x3a9   :  { %834 = vmatpush.msrb.mxu2 %v1856_v28  ;;  %854 = vmatpush.msra.mxu3 %v1861_v30 }
 0x3aa   :  { %815 = vmatpush.msra.mxu0 %v1869_v32 }
 0x3ab   :  { %1579 = vmatmul.msk.f32.vlgmr.msrb.gmra.mxu0 %vm277_vm6, %v2057_v50  ;;  %1580 = vmatmul.msk.f32.vlgmr.msra.gmra.mxu2 %vm277_vm6, %v2057_v50 }
 0x3ac   :  { %835 = vmatpush.msrb.mxu2 %v1866_v31  ;;  %855 = vmatpush.msra.mxu3 %v1871_v33 }
 0x3ad   :  { %876 = vmatpush.msrb.mxu0 %v1880_v37 }
 0x3ae   :  { %958 = vmatpush.msra.mxu2 %v1952_v11 }
 0x3af   :  { %877 = vmatpush.msrb.mxu0 %v1887_v40 }
 0x3b0   :  { %959 = vmatpush.msra.mxu2 %v1954_v12 }
 0x3b1   :  { %878 = vmatpush.msrb.mxu0 %v1891_v42 }
 0x3b2   :  { %960 = vmatpush.msra.mxu2 %v1962_v15 }
 0x3b3   :  { %879 = vmatpush.msrb.mxu0 %v1898_v44 }
 0x3b4   :  { %961 = vmatpush.msra.mxu2 %v1965_v16 }
 0x420   :  { %v644_v18 = vpop.f32.mrf.mxu0 }
 0x421   :  { %v645_v27 = vadd.f32 %v644_v18, %v1984_v59 }
 0x426   :  { %v664_v51 = vpop.f32.mrf.mxu2 }
 0x427   :  { %v665_v52 = vadd.f32 %v664_v51, %v1960_v14  ;;  %v684_v47 = vpop.f32.mrf.mxu3 }
 0x428   :  { %v708_v22 = vpop.f32.mrf.mxu0 }
 0x429   :  { %v709_v34 = vadd.f32 %v708_v22, %v645_v27 }
 0x42b   :  { %v1581_v35 = vmul.f32 -1.442695, %v709_v34 }
 0x42e   :  { %v728_v13 = vpop.f32.mrf.mxu2 }
 0x42f   :  { %v729_v53 = vadd.f32 %v728_v13, %v665_v52  ;;  %v162_v52 = vadd.f32 %v1948_v8, %v1911_v49  ;;  %v685_v13 = vadd.f32 %v684_v47, %v1987_v17 }
 0x431   :  { %v1582_v54 = vmul.f32 -1.442695, %v729_v53 }
 0x433   :  { %1663 = vpow2.f32 %v1582_v54 }
 0x439   :  { %v1664_v55 = vpop.eup %1663 }
 0x43a   :  { %v738_v56 = vadd.f32 1.0, %v1664_v55 }
 0x43c   :  { %1665 = vrcp.f32 %v738_v56  ;;  %v765_v62 = vand.u32 2147483648, %v738_v56  ;;  %v763_v0 = vand.u32 2147483647, %v738_v56  ;;  %vm759_vm9 = vweird.f32 %v738_v56 }
 0x43d   :  { %1667 = vpow2.f32 %v1581_v35 }
 0x43e   :  { %v766_v2 = vor.u32 1.1754944e-38, %v765_v62  ;;  %vm764_vm11 = vcmp.eq.f32.partialorder %v763_v0, 8.507059e+37 }
 0x442   :  { %v1666_v57 = vpop.eup %1665 }
 0x443   :  { %v755_v60 = vmul.f32 %v1666_v57, %v738_v56  ;;  %vm760_vm8 = vweird.f32 %v1666_v57  ;;  %v1668_v7 = vpop.eup %1667  ;;  %v176_v56 = vmax.f32 %v162_v52, 0.0 }
 0x444   :  { %vm761_vm10 = vmor %vm759_vm9, %vm760_vm8  ;;  %v737_v39 = vadd.f32 1.0, %v1668_v7 }
 0x445   :  { %v756_v61 = vsub.f32 1.0, %v755_v60  ;;  %v183_v62 = vsub.f32 0.0, %v176_v56 }
 0x446   :  { %1669 = vrcp.f32 %v737_v39  ;;  %v750_v60 = vand.u32 2147483648, %v737_v39  ;;  %vm744_vm13 = vweird.f32 %v737_v39 }
 0x447   :  { %v757_v63 = vmul.f32 %v1666_v57, %v756_v61  ;;  %v748_v61 = vand.u32 2147483647, %v737_v39 }
 0x449   :  { %v758_v1 = vadd.f32 %v1666_v57, %v757_v63  ;;  %vm749_vm15 = vcmp.eq.f32.partialorder %v748_v61, 8.507059e+37 }
 0x44b   :  { %v762_v3 = vsel %vm761_vm10, %v1666_v57, %v758_v1  ;;  %v751_v1 = vor.u32 1.1754944e-38, %v750_v60 }
 0x44c   :  { %v767_v5 = vsel %vm764_vm11, %v766_v2, %v762_v3  ;;  %v1670_v46 = vpop.eup %1669  ;;  %v193_v2 = vmul.f32 1.442695, %v183_v62 }
 0x44d   :  { %v769_v10 = vmul.f32 %v767_v5, %v2057_v50  ;;  %v740_v6 = vmul.f32 %v1670_v46, %v737_v39  ;;  %vm745_vm12 = vweird.f32 %v1670_v46 }
 0x44e   :  { %vm746_vm14 = vmor %vm744_vm13, %vm745_vm12 }
 0x44f   :  { %1583 = vmatmul.msk.f32.vlgmr.msrb.gmra.mxu3 %vm277_vm6, %v769_v10  ;;  %v741_v51 = vsub.f32 1.0, %v740_v6 }
 0x450   :  { %985 = vmatpush.msrb.mxu3 %v1832_v20 }
 0x451   :  { %v742_v53 = vmul.f32 %v1670_v46, %v741_v51 }
 0x452   :  { %986 = vmatpush.msrb.mxu3 %v1846_v24 }
 0x453   :  { %v743_v57 = vadd.f32 %v1670_v46, %v742_v53 }
 0x454   :  { %987 = vmatpush.msrb.mxu3 %v1859_v29 }
 0x455   :  { %v747_v63 = vsel %vm746_vm14, %v1670_v46, %v743_v57 }
 0x456   :  { %988 = vmatpush.msrb.mxu3 %v1869_v32  ;;  %v752_v3 = vsel %vm749_vm15, %v751_v1, %v747_v63 }
 0x4d2   :  { %v790_v54 = vpop.f32.mrf.mxu3 }
 0x4d3   :  { %v791_v55 = vadd.f32 %v790_v54, %v685_v13 }
 0x4d5   :  { %1671 = vtanh.f32 %v791_v55 }
 0x4d6   :  { %1673 = vpow2.f32 %v193_v2 }
 0x4db   :  { %v1672_v0 = vpop.eup %1671 }
 0x4dc   :  { %v794_v8 = vsub.f32 %v1672_v0, %v2057_v50 }
 0x4de   :  { %v795_v5 = vmul.f32 %v794_v8, %v752_v3 }
 0x4e0   :  { %v2089_v10 = vadd.f32 %v795_v5, %v2057_v50  ;;  %v1674_v50 = vpop.eup %1673 }
 0x4e2   :  { %1584 = vmatmul.msk.f32.vlgmr.msra.gmra.mxu0 %vm277_vm6, %v2089_v10  ;;  %1585 = vmatmul.msk.f32.vlgmr.msrb.gmra.mxu2 %vm277_vm6, %v2089_v10  ;;  %v2105_v18 = vmul.f32 %v1674_v50, %v2089_v10  ;;  %v165_v50 = vadd.f32 %v1950_v9, %v1911_v49 }
 0x4e3   :  { %1586 = vmatmul.msk.f32.vlgmr.msra.gmra.mxu3 %vm277_vm6, %v2089_v10  ;;  %896 = vmatpush.msra.mxu0 %v1878_v36 }
 0x4e4   :  { %1049 = vmatpush.msrb.mxu2 %v1880_v37  ;;  %1069 = vmatpush.msra.mxu3 %v1878_v36 }
 0x4e5   :  { %897 = vmatpush.msra.mxu0 %v1882_v38 }
 0x4e6   :  { %1050 = vmatpush.msrb.mxu2 %v1887_v40  ;;  %1070 = vmatpush.msra.mxu3 %v1882_v38 }
 0x4e7   :  { %898 = vmatpush.msra.mxu0 %v1889_v41 }
 0x4e8   :  { %1051 = vmatpush.msrb.mxu2 %v1891_v42  ;;  %1071 = vmatpush.msra.mxu3 %v1889_v41 }
 0x4e9   :  { %899 = vmatpush.msra.mxu0 %v1896_v43 }
 0x4ea   :  { %1587 = vmatmul.msk.f32.vlgmr.msrb.gmra.mxu0 %vm277_vm6, %v2105_v18  ;;  %1052 = vmatpush.msrb.mxu2 %v1898_v44 }
 0x4eb   :  { %1005 = vmatpush.msrb.mxu0 %v1829_v19  ;;  %1072 = vmatpush.msra.mxu3 %v1896_v43 }
 0x4ed   :  { %1006 = vmatpush.msrb.mxu0 %v1843_v23 }
 0x4ef   :  { %1007 = vmatpush.msrb.mxu0 %v1856_v28 }
 0x4f1   :  { %1008 = vmatpush.msrb.mxu0 %v1866_v31 }
 0x4f2   :  { %1588 = vmatmul.msk.f32.vlgmr.msra.gmra.mxu0 %vm277_vm6, %v2105_v18 }
 0x4f3   :  { %1131 = vmatpush.msra.mxu0 %v1952_v11 }
 0x4f5   :  { %1132 = vmatpush.msra.mxu0 %v1954_v12 }
 0x4f7   :  { %1133 = vmatpush.msra.mxu0 %v1962_v15 }
 0x4f9   :  { %1134 = vmatpush.msra.mxu0 %v1965_v16 }
 0x55f   :  { %v817_v22 = vpop.f32.mrf.mxu0 }
 0x560   :  { %v818_v27 = vadd.f32 %v817_v22, %v1984_v59 }
 0x565   :  { %v837_v7 = vpop.f32.mrf.mxu2 }
 0x566   :  { %v838_v39 = vadd.f32 %v837_v7, %v1960_v14  ;;  %v857_v22 = vpop.f32.mrf.mxu3 }
 0x567   :  { %v881_v34 = vpop.f32.mrf.mxu0 }
 0x568   :  { %v882_v35 = vadd.f32 %v881_v34, %v818_v27  ;;  %v177_v34 = vmax.f32 %v165_v50, 0.0 }
 0x56a   :  { %v1589_v1 = vmul.f32 -1.442695, %v882_v35 }
 0x56f   :  { %v901_v46 = vpop.f32.mrf.mxu0 }
 0x570   :  { %v902_v47 = vadd.f32 %v901_v46, %v838_v39 }
 0x572   :  { %v1590_v6 = vmul.f32 -1.442695, %v902_v47 }
 0x574   :  { %1675 = vpow2.f32 %v1590_v6 }
 0x57a   :  { %v1676_v51 = vpop.eup %1675 }
 0x57b   :  { %v911_v52 = vadd.f32 1.0, %v1676_v51 }
 0x57d   :  { %1677 = vrcp.f32 %v911_v52  ;;  %v938_v55 = vand.u32 2147483648, %v911_v52  ;;  %v936_v57 = vand.u32 2147483647, %v911_v52  ;;  %vm932_vm1 = vweird.f32 %v911_v52 }
 0x57e   :  { %1679 = vpow2.f32 %v1589_v1 }
 0x57f   :  { %v939_v61 = vor.u32 1.1754944e-38, %v938_v55  ;;  %vm937_vm3 = vcmp.eq.f32.partialorder %v936_v57, 8.507059e+37 }
 0x583   :  { %v1678_v13 = vpop.eup %1677 }
 0x584   :  { %v928_v53 = vmul.f32 %v1678_v13, %v911_v52  ;;  %vm933_vm0 = vweird.f32 %v1678_v13  ;;  %v1680_v8 = vpop.eup %1679 }
 0x585   :  { %vm934_vm2 = vmor %vm932_vm1, %vm933_vm0  ;;  %v910_v2 = vadd.f32 1.0, %v1680_v8 }
 0x586   :  { %v929_v54 = vsub.f32 1.0, %v928_v53 }
 0x587   :  { %1681 = vrcp.f32 %v910_v2  ;;  %v923_v47 = vand.u32 2147483648, %v910_v2  ;;  %vm917_vm5 = vweird.f32 %v910_v2  ;;  %v921_v6 = vand.u32 2147483647, %v910_v2 }
 0x588   :  { %v930_v56 = vmul.f32 %v1678_v13, %v929_v54 }
 0x589   :  { %v924_v9 = vor.u32 1.1754944e-38, %v923_v47  ;;  %vm922_vm8 = vcmp.eq.f32.partialorder %v921_v6, 8.507059e+37 }
 0x58a   :  { %v931_v60 = vadd.f32 %v1678_v13, %v930_v56 }
 0x58c   :  { %v935_v62 = vsel %vm934_vm2, %v1678_v13, %v931_v60 }
 0x58d   :  { %v940_v63 = vsel %vm937_vm3, %v939_v61, %v935_v62  ;;  %v1682_v3 = vpop.eup %1681  ;;  %v1721_v62 = vld [vmem:[#allocation2 + $0x188] sm:$0xff] }
 0x58e   :  { %v942_v0 = vmul.f32 %v940_v63, %v2105_v18  ;;  %v913_v5 = vmul.f32 %v1682_v3, %v910_v2  ;;  %vm918_vm4 = vweird.f32 %v1682_v3  ;;  %v1722_v63 = vld [vmem:[#allocation2 + $0x170] sm:$0xff] }
 0x58f   :  { %vm919_vm7 = vmor %vm917_vm5, %vm918_vm4 }
 0x590   :  { %1591 = vmatmul.msk.f32.vlgmr.msra.gmra.mxu2 %vm277_vm6, %v942_v0  ;;  %v914_v27 = vsub.f32 1.0, %v913_v5  ;;  %v1723_v0 = vld [vmem:[#allocation2 + $0x158] sm:$0xff] }
 0x591   :  { %1178 = vmatpush.msra.mxu2 %v1829_v19  ;;  %v858_v19 = vadd.f32 %v857_v22, %v1987_v17 }
 0x593   :  { %1179 = vmatpush.msra.mxu2 %v1843_v23  ;;  %v915_v23 = vmul.f32 %v1682_v3, %v914_v27 }
 0x595   :  { %1180 = vmatpush.msra.mxu2 %v1856_v28  ;;  %v184_v28 = vsub.f32 0.0, %v177_v34  ;;  %v916_v35 = vadd.f32 %v1682_v3, %v915_v23  ;;  %v168_v34 = vadd.f32 %v1853_v26, %v1911_v49 }
 0x597   :  { %1181 = vmatpush.msra.mxu2 %v1866_v31  ;;  %v195_v46 = vmul.f32 1.442695, %v184_v28  ;;  %v920_v51 = vsel %vm919_vm7, %v1682_v3, %v916_v35 }
 0x598   :  { %v925_v53 = vsel %vm922_vm8, %v924_v9, %v920_v51 }
 0x613   :  { %v963_v7 = vpop.f32.mrf.mxu2 }
 0x614   :  { %v964_v39 = vadd.f32 %v963_v7, %v858_v19  ;;  %v178_v7 = vmax.f32 %v168_v34, 0.0 }
 0x616   :  { %1683 = vtanh.f32 %v964_v39  ;;  %v185_v35 = vsub.f32 0.0, %v178_v7 }
 0x617   :  { %1685 = vpow2.f32 %v195_v46 }
 0x618   :  { %v197_v6 = vmul.f32 1.442695, %v185_v35 }
 0x61c   :  { %v1684_v52 = vpop.eup %1683 }
 0x61d   :  { %v967_v13 = vsub.f32 %v1684_v52, %v2105_v18  ;;  %v1686_v56 = vpop.eup %1685 }
 0x61f   :  { %v968_v54 = vmul.f32 %v967_v13, %v925_v53 }
 0x621   :  { %v2137_v55 = vadd.f32 %v968_v54, %v2105_v18 }
 0x623   :  { %1592 = vmatmul.msk.f32.vlgmr.msrb.gmra.mxu3 %vm277_vm6, %v2137_v55  ;;  %1593 = vmatmul.msk.f32.vlgmr.msrb.gmra.mxu0 %vm277_vm6, %v2137_v55  ;;  %v2144_v57 = vmul.f32 %v1686_v56, %v2137_v55 }
 0x624   :  { %1594 = vmatmul.msk.f32.vlgmr.msrb.gmra.mxu1 %vm277_vm6, %v2137_v55  ;;  %1198 = vmatpush.msrb.mxu3 %v1834_v21 }
 0x625   :  { %1595 = vmatmul.msk.f32.vlgmr.msrb.gmra.mxu2 %vm277_vm6, %v2144_v57  ;;  %1222 = vmatpush.msrb.mxu0 %v1880_v37 }
 0x626   :  { %1199 = vmatpush.msrb.mxu3 %v1848_v25  ;;  %1242 = vmatpush.msrb.mxu1 %v1878_v36 }
 0x627   :  { %1223 = vmatpush.msrb.mxu0 %v1887_v40  ;;  %1304 = vmatpush.msrb.mxu2 %v1952_v11 }
 0x628   :  { %1200 = vmatpush.msrb.mxu3 %v1861_v30  ;;  %1243 = vmatpush.msrb.mxu1 %v1882_v38 }
 0x629   :  { %1224 = vmatpush.msrb.mxu0 %v1891_v42  ;;  %1305 = vmatpush.msrb.mxu2 %v1954_v12 }
 0x62a   :  { %1201 = vmatpush.msrb.mxu3 %v1871_v33  ;;  %1244 = vmatpush.msrb.mxu1 %v1889_v41 }
 0x62b   :  { %1596 = vmatmul.msk.f32.vlgmr.msra.gmra.mxu3 %vm277_vm6, %v2144_v57  ;;  %1225 = vmatpush.msrb.mxu0 %v1898_v44 }
 0x62c   :  { %1245 = vmatpush.msrb.mxu1 %v1896_v43  ;;  %1306 = vmatpush.msrb.mxu2 %v1962_v15 }
 0x62d   :  { %1331 = vmatpush.msra.mxu3 %v1832_v20 }
 0x62e   :  { %1307 = vmatpush.msrb.mxu2 %v1965_v16 }
 0x62f   :  { %1332 = vmatpush.msra.mxu3 %v1846_v24 }
 0x631   :  { %1333 = vmatpush.msra.mxu3 %v1859_v29 }
 0x633   :  { %1334 = vmatpush.msra.mxu3 %v1869_v32 }
 0x6a0   :  { %v1010_v25 = vpop.f32.mrf.mxu0 }
 0x6a1   :  { %v1011_v30 = vadd.f32 %v1010_v25, %v1960_v14  ;;  %v1030_v19 = vpop.f32.mrf.mxu1 }
 0x6a2   :  { %v1031_v28 = vadd.f32 %v1030_v19, %v1987_v17 }
 0x6a6   :  { %v990_v21 = vpop.f32.mrf.mxu3 }
 0x6a7   :  { %v991_v1 = vadd.f32 %v990_v21, %v1984_v59 }
 0x6a8   :  { %v1054_v8 = vpop.f32.mrf.mxu2 }
 0x6a9   :  { %v1055_v2 = vadd.f32 %v1054_v8, %v991_v1 }
 0x6ab   :  { %v1597_v3 = vmul.f32 -1.442695, %v1055_v2 }
 0x6ae   :  { %v1074_v33 = vpop.f32.mrf.mxu3 }
 0x6af   :  { %v1075_v36 = vadd.f32 %v1074_v33, %v1011_v30  ;;  %v1724_v30 = vld [vmem:[#allocation2 + $0x190] sm:$0xff]  ;;  %v1726_v33 = vld [vmem:[#allocation2 + $0x178] sm:$0xff] }
 0x6b1   :  { %v1598_v37 = vmul.f32 -1.442695, %v1075_v36  ;;  %v1727_v36 = vld [vmem:[#allocation2 + $0xc8] sm:$0xff] }
 0x6b3   :  { %1687 = vpow2.f32 %v1598_v37  ;;  %v1728_v37 = vld [vmem:[#allocation2 + $0xa8] sm:$0xff] }
 0x6b9   :  { %v1688_v38 = vpop.eup %1687 }
 0x6ba   :  { %v1084_v40 = vadd.f32 1.0, %v1688_v38  ;;  %v1729_v38 = vld [vmem:[#allocation2 + $0x160] sm:$0xff] }
 0x6bc   :  { %1689 = vrcp.f32 %v1084_v40  ;;  %v1111_v43 = vand.u32 2147483648, %v1084_v40  ;;  %v1109_v29 = vand.u32 2147483647, %v1084_v40  ;;  %vm1105_vm10 = vweird.f32 %v1084_v40 }
 0x6bd   :  { %1691 = vpow2.f32 %v1597_v3 }
 0x6be   :  { %v1112_v44 = vor.u32 1.1754944e-38, %v1111_v43  ;;  %vm1110_vm12 = vcmp.eq.f32.partialorder %v1109_v29, 8.507059e+37  ;;  %v1734_v43 = vld [vmem:[#allocation2 + $0x78] sm:$0xff] }
 0x6c2   :  { %v1690_v20 = vpop.eup %1689 }
 0x6c3   :  { %v1101_v41 = vmul.f32 %v1690_v20, %v1084_v40  ;;  %vm1106_vm9 = vweird.f32 %v1690_v20  ;;  %v1692_v5 = vpop.eup %1691  ;;  %v1730_v40 = vld [vmem:[#allocation2 + $0xb0] sm:$0xff] }
 0x6c4   :  { %vm1107_vm11 = vmor %vm1105_vm10, %vm1106_vm9  ;;  %v1083_v50 = vadd.f32 1.0, %v1692_v5 }
 0x6c5   :  { %v1102_v42 = vsub.f32 1.0, %v1101_v41  ;;  %v1732_v41 = vld [vmem:[#allocation2 + $0x148] sm:$0xff] }
 0x6c6   :  { %1693 = vrcp.f32 %v1083_v50  ;;  %v1096_v51 = vand.u32 2147483648, %v1083_v50  ;;  %vm1090_vm14 = vweird.f32 %v1083_v50  ;;  %v1094_v52 = vand.u32 2147483647, %v1083_v50 }
 0x6c7   :  { %v1103_v24 = vmul.f32 %v1690_v20, %v1102_v42  ;;  %v1733_v42 = vld [vmem:[#allocation2 + $0x98] sm:$0xff] }
 0x6c8   :  { %v1097_v26 = vor.u32 1.1754944e-38, %v1096_v51  ;;  %vm1095_vm0 = vcmp.eq.f32.partialorder %v1094_v52, 8.507059e+37 }
 0x6c9   :  { %v1104_v32 = vadd.f32 %v1690_v20, %v1103_v24  ;;  %v1735_v24 = vld [vmem:[#allocation2 + $0x80] sm:$0xff] }
 0x6cb   :  { %v1108_v18 = vsel %vm1107_vm11, %v1690_v20, %v1104_v32  ;;  %v1731_v20 = vld [vmem:[#allocation2 + $0x90] sm:$0xff] }
 0x6cc   :  { %v1113_v60 = vsel %vm1110_vm12, %v1112_v44, %v1108_v18  ;;  %v1694_v22 = vpop.eup %1693 }
 0x6cd   :  { %v1115_v61 = vmul.f32 %v1113_v60, %v2144_v57  ;;  %v1086_v27 = vmul.f32 %v1694_v22, %v1083_v50  ;;  %vm1091_vm13 = vweird.f32 %v1694_v22 }
 0x6ce   :  { %vm1092_vm15 = vmor %vm1090_vm14, %vm1091_vm13 }
 0x6cf   :  { %1599 = vmatmul.msk.f32.vlgmr.msra.gmra.mxu0 %vm277_vm6, %v1115_v61  ;;  %v1087_v23 = vsub.f32 1.0, %v1086_v27 }
 0x6d0   :  { %1351 = vmatpush.msra.mxu0 %v1721_v62 }
 0x6d2   :  { %1352 = vmatpush.msra.mxu0 %v1722_v63 }
 0x6d4   :  { %1353 = vmatpush.msra.mxu0 %v1723_v0 }
 0x6d6   :  { %1354 = vmatpush.msra.mxu0 %v1866_v31  ;;  %v1088_v31 = vmul.f32 %v1694_v22, %v1087_v23 }
 0x6d8   :  { %v1089_v47 = vadd.f32 %v1694_v22, %v1088_v31  ;;  %v66_v31 = vld [vmem:[#allocation2 + $0x1c8] sm:$0xff] }
 0x6da   :  { %v1093_v9 = vsel %vm1092_vm15, %v1694_v22, %v1089_v47 }
 0x6db   :  { %v1098_v53 = vsel %vm1095_vm0, %v1097_v26, %v1093_v9 }
 0x74c   :  { %v1136_v39 = vpop.f32.mrf.mxu0 }
 0x74d   :  { %v1137_v46 = vadd.f32 %v1136_v39, %v1031_v28  ;;  %v67_v28 = vld [vmem:[#allocation2 + $0x1e0] sm:$0xff]  ;;  %v65_v39 = vld [vmem:[#allocation2 + $0x1b0] sm:$0xff] }
 0x74f   :  { %1695 = vtanh.f32 %v1137_v46  ;;  %v64_v46 = vld [vmem:[#allocation2 + $0x198] sm:$0xff] }
 0x750   :  { %1697 = vpow2.f32 %v197_v6  ;;  %v1736_v6 = vld [vmem:[%s2282_s3 + $0x1] ss:$0 sm:$0xff] }
 0x751   :  { %v171_v51 = vadd.f32 %v1736_v6, %v1901_v45 }
 0x755   :  { %v1696_v13 = vpop.eup %1695 }
 0x756   :  { %v1140_v49 = vsub.f32 %v1696_v13, %v2144_v57  ;;  %v1698_v21 = vpop.eup %1697  ;;  %v179_v13 = vmax.f32 %v171_v51, 0.0 }
 0x758   :  { %v1141_v54 = vmul.f32 %v1140_v49, %v1098_v53 }
 0x75a   :  { %v2182_v56 = vadd.f32 %v1141_v54, %v2144_v57  ;;  %v1725_v57 = vld [vmem:[#allocation2 + $0xc0] sm:$0xff]  ;;  %v186_v54 = vsub.f32 0.0, %v179_v13 }
 0x75c   :  { %1600 = vmatmul.msk.f32.vlgmr.msra.gmra.mxu1 %vm277_vm6, %v2182_v56  ;;  %1601 = vmatmul.msk.f32.vlgmr.msra.gmra.mxu2 %vm277_vm6, %v2182_v56  ;;  %v2189_v25 = vmul.f32 %v1698_v21, %v2182_v56 }
 0x75d   :  { %1602 = vmatmul.msk.f32.vlgmr.msrb.gmra.mxu3 %vm277_vm6, %v2182_v56  ;;  %1371 = vmatpush.msra.mxu1 %v1724_v30 }
 0x75e   :  { %1603 = vmatmul.msk.f32.vlgmr.msrb.gmra.mxu0 %vm277_vm6, %v2189_v25  ;;  %1395 = vmatpush.msra.mxu2 %v1725_v57  ;;  %v199_v57 = vmul.f32 1.442695, %v186_v54 }
 0x75f   :  { %1372 = vmatpush.msra.mxu1 %v1726_v33  ;;  %1415 = vmatpush.msrb.mxu3 %v1727_v36 }
 0x760   :  { %1396 = vmatpush.msra.mxu2 %v1728_v37  ;;  %1477 = vmatpush.msrb.mxu0 %v1952_v11 }
 0x761   :  { %1373 = vmatpush.msra.mxu1 %v1729_v38  ;;  %1416 = vmatpush.msrb.mxu3 %v1730_v40 }
 0x762   :  { %1397 = vmatpush.msra.mxu2 %v1731_v20  ;;  %1478 = vmatpush.msrb.mxu0 %v1954_v12 }
 0x763   :  { %1374 = vmatpush.msra.mxu1 %v1732_v41  ;;  %1417 = vmatpush.msrb.mxu3 %v1733_v42 }
 0x764   :  { %1604 = vmatmul.msk.f32.vlgmr.msrb.gmra.mxu1 %vm277_vm6, %v2189_v25  ;;  %1398 = vmatpush.msra.mxu2 %v1734_v43 }
 0x765   :  { %1418 = vmatpush.msrb.mxu3 %v1735_v24  ;;  %1479 = vmatpush.msrb.mxu0 %v1962_v15 }
 0x766   :  { %1504 = vmatpush.msrb.mxu1 %v67_v28 }
 0x767   :  { %1480 = vmatpush.msrb.mxu0 %v1965_v16 }
 0x768   :  { %1505 = vmatpush.msrb.mxu1 %v66_v31 }
 0x76a   :  { %1506 = vmatpush.msrb.mxu1 %v65_v39 }
 0x76c   :  { %1507 = vmatpush.msrb.mxu1 %v64_v46 }
 0x7d9   :  { %v1163_v11 = vpop.f32.mrf.mxu1 }
 0x7da   :  { %v1164_v22 = vadd.f32 %v1163_v11, %v1984_v59 }
 0x7db   :  { %v1227_v27 = vpop.f32.mrf.mxu0 }
 0x7dc   :  { %v1228_v34 = vadd.f32 %v1227_v27, %v1164_v22 }
 0x7de   :  { %v1605_v19 = vmul.f32 -1.442695, %v1228_v34 }
 0x7df   :  { %v1183_v29 = vpop.f32.mrf.mxu2 }
 0x7e0   :  { %v1184_v32 = vadd.f32 %v1183_v29, %v1960_v14  ;;  %v1203_v9 = vpop.f32.mrf.mxu3 }
 0x7e1   :  { %v1247_v12 = vpop.f32.mrf.mxu1  ;;  %v1204_v26 = vadd.f32 %v1203_v9, %v1987_v17 }
 0x7e2   :  { %v1248_v44 = vadd.f32 %v1247_v12, %v1184_v32 }
 0x7e4   :  { %v1606_v18 = vmul.f32 -1.442695, %v1248_v44 }
 0x7e6   :  { %1699 = vpow2.f32 %v1606_v18 }
 0x7ec   :  { %v1700_v60 = vpop.eup %1699 }
 0x7ed   :  { %v1257_v61 = vadd.f32 1.0, %v1700_v60 }
 0x7ef   :  { %1701 = vrcp.f32 %v1257_v61  ;;  %v1284_v1 = vand.u32 2147483648, %v1257_v61  ;;  %v1282_v15 = vand.u32 2147483647, %v1257_v61  ;;  %vm1278_vm2 = vweird.f32 %v1257_v61 }
 0x7f0   :  { %1703 = vpow2.f32 %v1605_v19 }
 0x7f1   :  { %v1285_v2 = vor.u32 1.1754944e-38, %v1284_v1  ;;  %vm1283_vm4 = vcmp.eq.f32.partialorder %v1282_v15, 8.507059e+37 }
 0x7f5   :  { %v1702_v62 = vpop.eup %1701 }
 0x7f6   :  { %v1274_v63 = vmul.f32 %v1702_v62, %v1257_v61  ;;  %vm1279_vm1 = vweird.f32 %v1702_v62  ;;  %v1704_v23 = vpop.eup %1703 }
 0x7f7   :  { %vm1280_vm3 = vmor %vm1278_vm2, %vm1279_vm1  ;;  %v1256_v7 = vadd.f32 1.0, %v1704_v23 }
 0x7f8   :  { %v1275_v0 = vsub.f32 1.0, %v1274_v63 }
 0x7f9   :  { %1705 = vrcp.f32 %v1256_v7  ;;  %v1269_v33 = vand.u32 2147483648, %v1256_v7  ;;  %vm1263_vm7 = vweird.f32 %v1256_v7  ;;  %v1267_v36 = vand.u32 2147483647, %v1256_v7 }
 0x7fa   :  { %v1276_v8 = vmul.f32 %v1702_v62, %v1275_v0 }
 0x7fb   :  { %v1270_v45 = vor.u32 1.1754944e-38, %v1269_v33  ;;  %vm1268_vm9 = vcmp.eq.f32.partialorder %v1267_v36, 8.507059e+37 }
 0x7fc   :  { %v1277_v16 = vadd.f32 %v1702_v62, %v1276_v8 }
 0x7fe   :  { %v1281_v3 = vsel %vm1280_vm3, %v1702_v62, %v1277_v16 }
 0x7ff   :  { %v1286_v5 = vsel %vm1283_vm4, %v1285_v2, %v1281_v3  ;;  %v1706_v35 = vpop.eup %1705 }
 0x800   :  { %v1288_v50 = vmul.f32 %v1286_v5, %v2189_v25  ;;  %v1259_v47 = vmul.f32 %v1706_v35, %v1256_v7  ;;  %vm1264_vm5 = vweird.f32 %v1706_v35 }
 0x801   :  { %vm1265_vm8 = vmor %vm1263_vm7, %vm1264_vm5 }
 0x802   :  { %1607 = vmatmul.msk.f32.vlgmr.msrb.gmra.mxu2 %vm277_vm6, %v1288_v50  ;;  %v1260_v52 = vsub.f32 1.0, %v1259_v47 }
 0x804   :  { %v1261_v49 = vmul.f32 %v1706_v35, %v1260_v52 }
 0x806   :  { %v1262_v30 = vadd.f32 %v1706_v35, %v1261_v49 }
 0x808   :  { %v1266_v37 = vsel %vm1265_vm8, %v1706_v35, %v1262_v30 }
 0x809   :  { %v1271_v20 = vsel %vm1268_vm9, %v1270_v45, %v1266_v37 }
 0x885   :  { %v1309_v53 = vpop.f32.mrf.mxu2 }
 0x886   :  { %v1310_v21 = vadd.f32 %v1309_v53, %v1204_v26 }
 0x888   :  { %1707 = vtanh.f32 %v1310_v21 }
 0x889   :  { %1709 = vpow2.f32 %v199_v57 }
 0x88e   :  { %v1708_v38 = vpop.eup %1707 }
 0x88f   :  { %v1313_v40 = vsub.f32 %v1708_v38, %v2189_v25  ;;  %v1710_v43 = vpop.eup %1709 }
 0x891   :  { %v1314_v41 = vmul.f32 %v1313_v40, %v1271_v20 }
 0x893   :  { %v1315_v42 = vadd.f32 %v1314_v41, %v2189_v25 }
 0x895   :  { %1608 = vmatmul.msk.f32.vlgmr.msra.gmra.mxu3 %vm277_vm6, %v1315_v42  ;;  %1609 = vmatmul.msk.f32.vlgmr.msra.gmra.mxu0 %vm277_vm6, %v1315_v42  ;;  %v2214_v24 = vmul.f32 %v1710_v43, %v1315_v42 }
 0x896   :  { %1610 = vmatmul.msk.f32.vlgmr.msra.gmra.mxu1 %vm277_vm6, %v1315_v42 }
 0x897   :  { %1611 = vmatmul.msk.f32.vlgmr.msra.gmra.mxu2 %vm277_vm6, %v2214_v24 }
 0x89d   :  { %1612 = vmatmul.msk.f32.vlgmr.msrb.gmra.mxu3 %vm277_vm6, %v2214_v24 }
 0x89e   :  { %1616 = vmatmul.msk.f32.vlgmr.msrb.gmra.mxu1 %vm277_vm6, %v1915_v4  ;;  %v2237_v4 = vld [vmem:[%s2282_s3 + $0x4] ss:$0 sm:$0xff] }
 0x8a6   :  { %1617 = vmatmul.msk.f32.gmra.mxu1 %vm277_vm6, %v1993_v58 }
 0x8ae   :  { %1618 = vmatmul.msk.f32.gmra.mxu1 %vm277_vm6, %v2041_v48 }
 0x8b6   :  { %1619 = vmatmul.msk.f32.gmra.mxu1 %vm277_vm6, %v2089_v10 }
 0x8be   :  { %1620 = vmatmul.msk.f32.gmra.mxu1 %vm277_vm6, %v2137_v55 }
 0x8c6   :  { %1621 = vmatmul.msk.f32.gmra.mxu1 %vm277_vm6, %v2182_v56 }
 0x8ce   :  { %1622 = vmatmul.msk.f32.gmra.mxu1 %vm277_vm6, %v1315_v42 }
 0x912   :  { %v1356_v48 = vpop.f32.mrf.mxu0 }
 0x913   :  { %v1376_v25 = vpop.f32.mrf.mxu1  ;;  %v1357_v10 = vadd.f32 %v1356_v48, %v1960_v14 }
 0x914   :  { %v1377_v26 = vadd.f32 %v1376_v25, %v1987_v17 }
 0x918   :  { %v1336_v11 = vpop.f32.mrf.mxu3 }
 0x919   :  { %v1337_v39 = vadd.f32 %v1336_v11, %v1984_v59 }
 0x91a   :  { %v1400_v35 = vpop.f32.mrf.mxu2 }
 0x91b   :  { %v1509_v58 = vpop.f32.mrf.mxu1  ;;  %v1401_v46 = vadd.f32 %v1400_v35, %v1337_v39 }
 0x91c   :  { %v1510_v29 = vadd.f32 %v1509_v58, %v2237_v4 }
 0x91d   :  { %v1613_v47 = vmul.f32 -1.442695, %v1401_v46 }
 0x91e   :  { %1533 = vst [vmem:[%s2283_s4] sm:$0xff] %v1510_v29 }
 0x920   :  { %v1420_v55 = vpop.f32.mrf.mxu3 }
 0x921   :  { %v1421_v56 = vadd.f32 %v1420_v55, %v1357_v10 }
 0x923   :  { %v1614_v32 = vmul.f32 -1.442695, %v1421_v56  ;;  %v1512_v12 = vpop.f32.mrf.mxu1 }
 0x924   :  { %v1513_v44 = vadd.f32 %v1512_v12, %v2237_v4 }
 0x925   :  { %1711 = vpow2.f32 %v1614_v32 }
 0x926   :  { %1534 = vst [vmem:[%s2283_s4 + $0x8] sm:$0xff] %v1513_v44 }
 0x92b   :  { %v1712_v18 = vpop.eup %1711  ;;  %v1515_v60 = vpop.f32.mrf.mxu1 }
 0x92c   :  { %v1430_v61 = vadd.f32 1.0, %v1712_v18  ;;  %v1516_v62 = vadd.f32 %v1515_v60, %v2237_v4 }
 0x92e   :  { %1713 = vrcp.f32 %v1430_v61  ;;  %1535 = vst [vmem:[%s2283_s4 + $0x10] sm:$0xff] %v1516_v62  ;;  %v1457_v15 = vand.u32 2147483648, %v1430_v61  ;;  %v1455_v2 = vand.u32 2147483647, %v1430_v61  ;;  %vm1451_vm11 = vweird.f32 %v1430_v61 }
 0x92f   :  { %1715 = vpow2.f32 %v1613_v47 }
 0x930   :  { %v1458_v50 = vor.u32 1.1754944e-38, %v1457_v15  ;;  %vm1456_vm13 = vcmp.eq.f32.partialorder %v1455_v2, 8.507059e+37 }
 0x933   :  { %v1518_v14 = vpop.f32.mrf.mxu1 }
 0x934   :  { %v1714_v63 = vpop.eup %1713  ;;  %v1519_v0 = vadd.f32 %v1518_v14, %v2237_v4 }
 0x935   :  { %v1447_v1 = vmul.f32 %v1714_v63, %v1430_v61  ;;  %vm1452_vm10 = vweird.f32 %v1714_v63  ;;  %v1716_v6 = vpop.eup %1715 }
 0x936   :  { %1536 = vst [vmem:[%s2283_s4 + $0x18] sm:$0xff] %v1519_v0  ;;  %vm1453_vm12 = vmor %vm1451_vm11, %vm1452_vm10  ;;  %v1429_v51 = vadd.f32 1.0, %v1716_v6 }
 0x937   :  { %v1448_v8 = vsub.f32 1.0, %v1447_v1 }
 0x938   :  { %1717 = vrcp.f32 %v1429_v51  ;;  %v1442_v30 = vand.u32 2147483648, %v1429_v51  ;;  %vm1436_vm15 = vweird.f32 %v1429_v51  ;;  %v1440_v59 = vand.u32 2147483647, %v1429_v51 }
 0x939   :  { %v1449_v16 = vmul.f32 %v1714_v63, %v1448_v8 }
 0x93a   :  { %v1443_v36 = vor.u32 1.1754944e-38, %v1442_v30  ;;  %vm1441_vm1 = vcmp.eq.f32.partialorder %v1440_v59, 8.507059e+37 }
 0x93b   :  { %v1521_v3 = vpop.f32.mrf.mxu1  ;;  %v1450_v5 = vadd.f32 %v1714_v63, %v1449_v16 }
 0x93c   :  { %v1522_v22 = vadd.f32 %v1521_v3, %v2237_v4 }
 0x93d   :  { %v1454_v27 = vsel %vm1453_vm12, %v1714_v63, %v1450_v5 }
 0x93e   :  { %1537 = vst [vmem:[%s2283_s4 + $0x20] sm:$0xff] %v1522_v22  ;;  %v1459_v34 = vsel %vm1456_vm13, %v1458_v50, %v1454_v27  ;;  %v1718_v52 = vpop.eup %1717 }
 0x93f   :  { %v1461_v19 = vmul.f32 %v1459_v34, %v2214_v24  ;;  %v1432_v9 = vmul.f32 %v1718_v52, %v1429_v51  ;;  %vm1437_vm14 = vweird.f32 %v1718_v52 }
 0x940   :  { %vm1438_vm0 = vmor %vm1436_vm15, %vm1437_vm14 }
 0x941   :  { %1615 = vmatmul.msk.f32.vlgmr.msrb.gmra.mxu0 %vm277_vm6, %v1461_v19  ;;  %v1433_v13 = vsub.f32 1.0, %v1432_v9 }
 0x943   :  { %v1524_v23 = vpop.f32.mrf.mxu1  ;;  %v1434_v53 = vmul.f32 %v1718_v52, %v1433_v13 }
 0x944   :  { %v1525_v7 = vadd.f32 %v1524_v23, %v2237_v4 }
 0x945   :  { %v1435_v21 = vadd.f32 %v1718_v52, %v1434_v53 }
 0x946   :  { %1538 = vst [vmem:[%s2283_s4 + $0x28] sm:$0xff] %v1525_v7 }
 0x947   :  { %v1439_v57 = vsel %vm1438_vm0, %v1718_v52, %v1435_v21 }
 0x948   :  { %v1444_v38 = vsel %vm1441_vm1, %v1443_v36, %v1439_v57 }
 0x94b   :  { %v1527_v28 = vpop.f32.mrf.mxu1 }
 0x94c   :  { %v1528_v31 = vadd.f32 %v1527_v28, %v2237_v4 }
 0x94e   :  { %1539 = vst [vmem:[%s2283_s4 + $0x30] sm:$0xff] %v1528_v31 }
 0x9be   :  { %v1482_v49 = vpop.f32.mrf.mxu0 }
 0x9bf   :  { %v1483_v54 = vadd.f32 %v1482_v49, %v1377_v26 }
 0x9c1   :  { %1719 = vtanh.f32 %v1483_v54 }
 0x9c7   :  { %v1720_v33 = vpop.eup %1719 }
 0x9c8   :  { %v1486_v37 = vsub.f32 %v1720_v33, %v2214_v24 }
 0x9ca   :  { %v1487_v45 = vmul.f32 %v1486_v37, %v1444_v38 }
 0x9cc   :  { %v1488_v17 = vadd.f32 %v1487_v45, %v2214_v24 }
 0x9ce   :  { %1623 = vmatmul.msk.f32.gmra.mxu1 %vm277_vm6, %v1488_v17 }
 0xa4b   :  { %v1530_v40 = vpop.f32.mrf.mxu1 }
 0xa4c   :  { %v1531_v20 = vadd.f32 %v1530_v40, %v2237_v4 }
 0xa4e   :  { %1540 = vst [vmem:[%s2283_s4 + $0x38] sm:$0xff] %v1531_v20 }
 0xa4f   :  { %1545 = vsyncpa [#allocation3], 1 }

</bundles_post_ra>
